<compile_context>
chip_gen: v5e
topology: v5e:2x2
jax: 0.10.0
libtpu: 0.0.40
codegen_flags: <defaults>
</compile_context>

<pallas_src>
import math

import jax
import jax.numpy as jnp
from jax.experimental import pallas as pl
from jax.experimental.pallas import tpu as pltpu

# ---------------- model config (small, consistent with the module) ----------------
N           = 4     # batch of "thoughts"
INPUT_SIZE  = 32
EMB         = 32    # embedding_size == GRU hidden size
VOCAB       = 32
UTT_LEN     = 8
NUM_LAYERS  = 2
# dropout = 0.0 / eval mode -> nn.Dropout and inter-layer GRU dropout are identity.
# TODO(synk): stochastic dropout (training mode, p>0) is not implemented.

F32  = jnp.float32
BF16 = jnp.bfloat16

# ---------------- packed-layout constants ----------------
LANES = 128                      # one vreg of lanes; gates packed at 32-lane offsets
E     = EMB                      # 4 * E == LANES  ->  [ r | z | n_x | n_h ]

# weight-slab row offsets (all multiples of 8)
OFF_IN  = 0
OFF_HH  = [INPUT_SIZE]                                        # layer-0 h-path
OFF_IH  = [None]                                              # layer-0 has no x-path
for _l in range(1, NUM_LAYERS):
    OFF_IH.append(OFF_HH[-1] + EMB)
    OFF_HH.append(OFF_IH[-1] + EMB)
OFF_OUT = OFF_HH[-1] + EMB
W_ROWS  = OFF_OUT + EMB                                       # 160 for 2 layers

# bias-slab rows: [ b_in | gate bias layer 0..L-1 | b_out ]
B_ROWS = NUM_LAYERS + 2                                       # 4


def _lang_sender_kernel(thoughts_ref, w_ref, b_ref, utts_ref):
    """Whole forward in one VMEM-resident kernel (shapes are tiny)."""

    # ---- hoisted weight/bias loads (bf16 weights, ~15 vregs after compaction) ----
    w_in   = w_ref[OFF_IN:OFF_IN + INPUT_SIZE, 0:E]                    # [IN, E]  bf16
    w_hh   = [w_ref[OFF_HH[l]:OFF_HH[l] + E, :] for l in range(NUM_LAYERS)]   # [E,128]
    w_ih   = [None] + [w_ref[OFF_IH[l]:OFF_IH[l] + E, :]
                       for l in range(1, NUM_LAYERS)]                  # [E,128] bf16
    w_out  = w_ref[OFF_OUT:OFF_OUT + E, :]                             # [E,128] (cols 0:V)

    b_in   = b_ref[0:1, 0:E]                                           # [1, E]  f32
    b_gate = [b_ref[1 + l:2 + l, :] for l in range(NUM_LAYERS)]        # [1,128] f32
    b_out  = b_ref[1 + NUM_LAYERS:2 + NUM_LAYERS, :]                   # [1,128] f32

    def gru_cell(g, h_prev):
        # g: [N, 128] f32 pre-biased gate pre-activations, 32-lane blocks
        #    [ r | z | n_x | n_h ].  PyTorch GRU: n = tanh(n_x + r * n_h),
        #    h' = (1 - z) * n + z * h.  The 32-lane slices lower to XLU lane
        #    rotations (idle slot) and happen BEFORE the h update, so unused
        #    lanes never feed back into state.
        r = jax.nn.sigmoid(g[:, 0:E])
        z = jax.nn.sigmoid(g[:, E:2 * E])
        n = jnp.tanh(g[:, 2 * E:3 * E] + r * g[:, 3 * E:4 * E])
        return (1.0 - z) * n + z * h_prev

    # ---- h_in: embs = thoughts @ W_in + b_in  (dropout = identity) ----
    embs = jnp.dot(thoughts_ref[...].astype(BF16), w_in,
                   preferred_element_type=F32) + b_in                  # [N, E] f32

    # ---- layer 0: the GRU input sequence is all-zeros, so the x-path matmul is
    #      eliminated (its b_ih is folded into the bias row); only the serialized
    #      [N,E]@[E,128] h-path matmul remains per step. ----
    bias0 = jnp.broadcast_to(b_gate[0], (N, LANES))                    # hoisted
    h = embs
    outs = []
    for _ in range(UTT_LEN):                     # static unroll (utt_len small)
        g = jnp.dot(h.astype(BF16), w_hh[0], preferred_element_type=F32) + bias0
        h = gru_cell(g, h)
        outs.append(h)
    x_all = jnp.concatenate(outs, axis=0)                              # [T*N, E] f32

    # ---- layers >= 1 (cuDNN-style): the x-path projection of the whole sequence
    #      is ONE batched matmul off the critical path; the recurrence keeps only
    #      the h-path matmul + one add (no per-step lane concat). ----
    for l in range(1, NUM_LAYERS):
        gi_all = jnp.dot(x_all.astype(BF16), w_ih[l],
                         preferred_element_type=F32) + b_gate[l]       # [T*N, 128]
        h = jnp.zeros((N, E), F32)
        outs = []
        for t in range(UTT_LEN):
            gh = jnp.dot(h.astype(BF16), w_hh[l], preferred_element_type=F32)
            g = gi_all[t * N:(t + 1) * N, :] + gh
            h = gru_cell(g, h)
            outs.append(h)
        x_all = jnp.concatenate(outs, axis=0)    # inter-layer dropout = identity

    # ---- batched output projection: one matmul, one lane-dense store ----
    logits = jnp.dot(x_all.astype(BF16), w_out,
                     preferred_element_type=F32) + b_out               # [T*N, 128]
    utts_ref[...] = logits


def lang_sender_forward(thoughts, packed_params):
    w_slab, b_slab = packed_params
    vmem = pl.BlockSpec(memory_space=pltpu.MemorySpace.VMEM)

    TN = UTT_LEN * N
    flops = (2 * N * INPUT_SIZE * EMB                              # h_in
             + UTT_LEN * 2 * N * EMB * LANES                       # layer-0 cells
             + (NUM_LAYERS - 1) * (2 * TN * EMB * LANES            # batched x-path
                                   + UTT_LEN * 2 * N * EMB * LANES)  # h-path cells
             + 2 * TN * EMB * LANES)                               # output proj
    transcendentals = UTT_LEN * NUM_LAYERS * 3 * N * EMB
    bytes_accessed = (thoughts.size * thoughts.dtype.itemsize
                      + w_slab.size * w_slab.dtype.itemsize
                      + b_slab.size * b_slab.dtype.itemsize
                      + TN * LANES * 4)

    out2d = pl.pallas_call(
        _lang_sender_kernel,
        out_shape=jax.ShapeDtypeStruct((TN, LANES), jnp.float32),
        in_specs=[vmem, vmem, vmem],
        out_specs=vmem,
        cost_estimate=pl.CostEstimate(flops=flops,
                                      transcendentals=transcendentals,
                                      bytes_accessed=bytes_accessed),
    )(thoughts, w_slab, b_slab)
    # free layout plumbing back to PyTorch's seq-first [utt_len, N, vocab]
    return out2d[:, :VOCAB].reshape(UTT_LEN, N, VOCAB)


# ---------------- parameter packing (done once, outside the kernel) ----------------
def pack_params(params):
    """Pack into one bf16 weight slab [W_ROWS, 128] and one f32 bias slab [B_ROWS, 128].

    Gate column blocks (32 lanes each): [ r | z | n_x | n_h ].
      * layer 0 has no x-path (input is all zeros) -> only W_hh packed; its
        b_ih contribution is folded into the bias row.
      * gate bias rows hold [ b_ih_r+b_hh_r | b_ih_z+b_hh_z | b_ih_n | b_hh_n ],
        identical structure for every layer.
    """
    (w_in, b_in, w_ih, w_hh, b_ih, b_hh, w_out, b_out) = params
    V = VOCAB

    W = jnp.zeros((W_ROWS, LANES), jnp.float32)
    W = W.at[OFF_IN:OFF_IN + INPUT_SIZE, 0:E].set(w_in)
    # layer 0: hidden path only -> [ r_h | z_h | 0 | n_h ]
    W = W.at[OFF_HH[0]:OFF_HH[0] + E, 0:E].set(w_hh[0][:, 0:E])
    W = W.at[OFF_HH[0]:OFF_HH[0] + E, E:2 * E].set(w_hh[0][:, E:2 * E])
    W = W.at[OFF_HH[0]:OFF_HH[0] + E, 3 * E:4 * E].set(w_hh[0][:, 2 * E:3 * E])
    # layers >= 1: x-path [ r_x | z_x | n_x | 0 ] and h-path [ r_h | z_h | 0 | n_h ]
    for l in range(1, NUM_LAYERS):
        oi, oh = OFF_IH[l], OFF_HH[l]
        W = W.at[oi:oi + E, 0:E].set(w_ih[l][:, 0:E])
        W = W.at[oi:oi + E, E:2 * E].set(w_ih[l][:, E:2 * E])
        W = W.at[oi:oi + E, 2 * E:3 * E].set(w_ih[l][:, 2 * E:3 * E])
        W = W.at[oh:oh + E, 0:E].set(w_hh[l][:, 0:E])
        W = W.at[oh:oh + E, E:2 * E].set(w_hh[l][:, E:2 * E])
        W = W.at[oh:oh + E, 3 * E:4 * E].set(w_hh[l][:, 2 * E:3 * E])
    # h_out (padded to 128 lanes for a lane-dense output store)
    W = W.at[OFF_OUT:OFF_OUT + E, 0:V].set(w_out)
    W = W.astype(BF16)

    B = jnp.zeros((B_ROWS, LANES), jnp.float32)
    B = B.at[0, 0:E].set(b_in.reshape(E))
    for l in range(NUM_LAYERS):
        bi = b_ih[l].reshape(3 * E)
        bh = b_hh[l].reshape(3 * E)
        B = B.at[1 + l, 0:E].set(bi[0:E] + bh[0:E])                       # r
        B = B.at[1 + l, E:2 * E].set(bi[E:2 * E] + bh[E:2 * E])           # z
        B = B.at[1 + l, 2 * E:3 * E].set(bi[2 * E:3 * E])                 # n_x
        B = B.at[1 + l, 3 * E:4 * E].set(bh[2 * E:3 * E])                 # n_h
    B = B.at[1 + NUM_LAYERS, 0:VOCAB].set(b_out.reshape(VOCAB))
    return W, B


# ---------------- deterministic parameter init (PyTorch-style uniform) ----------------
def init_params(key):
    ks = jax.random.split(key, 8)

    def unif(k, shape, fan):
        bound = 1.0 / math.sqrt(fan)
        return jax.random.uniform(k, shape, jnp.float32, -bound, bound)

    w_in = unif(ks[0], (INPUT_SIZE, EMB), INPUT_SIZE)           # [in, E]
    b_in = unif(ks[1], (1, EMB), INPUT_SIZE)
    w_ih = unif(ks[2], (NUM_LAYERS, EMB, 3 * EMB), EMB)         # [L, in, 3E]
    w_hh = unif(ks[3], (NUM_LAYERS, EMB, 3 * EMB), EMB)         # [L, E, 3E]
    b_ih = unif(ks[4], (NUM_LAYERS, 1, 3 * EMB), EMB)
    b_hh = unif(ks[5], (NUM_LAYERS, 1, 3 * EMB), EMB)
    w_out = unif(ks[6], (EMB, VOCAB), EMB)                      # [E, V]
    b_out = unif(ks[7], (1, VOCAB), EMB)
    return (w_in, b_in, w_ih, w_hh, b_ih, b_hh, w_out, b_out)


# ---------------- pure-JAX reference (same math, unpacked f32 params) ----------------
def reference_forward(thoughts, params):
    (w_in, b_in, w_ih, w_hh, b_ih, b_hh, w_out, b_out) = params
    embs = thoughts @ w_in + b_in
    h = [embs if l == 0 else jnp.zeros_like(embs) for l in range(NUM_LAYERS)]
    outs = []
    x_zero = jnp.zeros_like(embs)
    for _ in range(UTT_LEN):
        x = x_zero
        for l in range(NUM_LAYERS):
            gi = x @ w_ih[l] + b_ih[l]
            gh = h[l] @ w_hh[l] + b_hh[l]
            r = jax.nn.sigmoid(gi[:, :E] + gh[:, :E])
            z = jax.nn.sigmoid(gi[:, E:2 * E] + gh[:, E:2 * E])
            n = jnp.tanh(gi[:, 2 * E:] + r * gh[:, 2 * E:])
            h[l] = (1.0 - z) * n + z * h[l]
            x = h[l]
        outs.append(x @ w_out + b_out)
    return jnp.stack(outs, axis=0)


if __name__ == "__main__":
    key = jax.random.PRNGKey(0)
    k_x, k_p = jax.random.split(key)
    thoughts = jax.random.normal(k_x, (N, INPUT_SIZE), jnp.float32)
    params = init_params(k_p)
    packed = pack_params(params)

    utts = lang_sender_forward(thoughts, packed)
    utts = jax.block_until_ready(utts)

    ref = reference_forward(thoughts, params)
    assert utts.shape == (UTT_LEN, N, VOCAB)
    # bf16 matmul operands (f32 accumulation) -> relaxed tolerance vs. the f32 reference.
    assert jnp.allclose(utts, ref, atol=5e-2, rtol=5e-2), "mismatch vs reference"
    print("KERNEL_OK")
</pallas_src>

<mosaic_0001>
module attributes {stable_mosaic.version = 11 : i64} {
  func.func @_lang_sender_kernel(%arg0: memref<4x32xf32, #tpu.memory_space<vmem>>, %arg1: memref<160x128xbf16, #tpu.memory_space<vmem>>, %arg2: memref<4x128xf32, #tpu.memory_space<vmem>>, %arg3: memref<32x128xf32, #tpu.memory_space<vmem>>) attributes {dimension_semantics = [], scalar_prefetch = 0 : i64, scratch_operands = 0 : i64, tpu.core_type = #tpu.core_type<tc>} {
    %c0 = arith.constant 0 : index
    %c0_0 = arith.constant 0 : index
    %0 = vector.load %arg1[%c0, %c0_0] : memref<160x128xbf16, #tpu.memory_space<vmem>>, vector<32x32xbf16>
    %c32 = arith.constant 32 : index
    %c0_1 = arith.constant 0 : index
    %1 = vector.load %arg1[%c32, %c0_1] : memref<160x128xbf16, #tpu.memory_space<vmem>>, vector<32x128xbf16>
    %c96 = arith.constant 96 : index
    %c0_2 = arith.constant 0 : index
    %2 = vector.load %arg1[%c96, %c0_2] : memref<160x128xbf16, #tpu.memory_space<vmem>>, vector<32x128xbf16>
    %c64 = arith.constant 64 : index
    %c0_3 = arith.constant 0 : index
    %3 = vector.load %arg1[%c64, %c0_3] : memref<160x128xbf16, #tpu.memory_space<vmem>>, vector<32x128xbf16>
    %c128 = arith.constant 128 : index
    %c0_4 = arith.constant 0 : index
    %4 = vector.load %arg1[%c128, %c0_4] : memref<160x128xbf16, #tpu.memory_space<vmem>>, vector<32x128xbf16>
    %c0_5 = arith.constant 0 : index
    %c0_6 = arith.constant 0 : index
    %5 = vector.load %arg2[%c0_5, %c0_6] : memref<4x128xf32, #tpu.memory_space<vmem>>, vector<1x32xf32>
    %c1 = arith.constant 1 : index
    %c0_7 = arith.constant 0 : index
    %6 = vector.load %arg2[%c1, %c0_7] : memref<4x128xf32, #tpu.memory_space<vmem>>, vector<1x128xf32>
    %c2 = arith.constant 2 : index
    %c0_8 = arith.constant 0 : index
    %7 = vector.load %arg2[%c2, %c0_8] : memref<4x128xf32, #tpu.memory_space<vmem>>, vector<1x128xf32>
    %c3 = arith.constant 3 : index
    %c0_9 = arith.constant 0 : index
    %8 = vector.load %arg2[%c3, %c0_9] : memref<4x128xf32, #tpu.memory_space<vmem>>, vector<1x128xf32>
    %c0_10 = arith.constant 0 : index
    %c0_11 = arith.constant 0 : index
    %9 = vector.load %arg0[%c0_10, %c0_11] : memref<4x32xf32, #tpu.memory_space<vmem>>, vector<4x32xf32>
    %10 = arith.truncf %9 : vector<4x32xf32> to vector<4x32xbf16>
    %cst = arith.constant dense<0.000000e+00> : vector<4x32xf32>
    %11 = tpu.matmul %10, %0, %cst {dimension_numbers = #tpu.dot_dimension_numbers<[1], [0], [0], [1], [0, 0, 1, 1], [], []>} : vector<4x32xbf16>, vector<32x32xbf16>, vector<4x32xf32> -> vector<4x32xf32>
    %12 = vector.broadcast %5 : vector<1x32xf32> to vector<4x32xf32>
    %13 = arith.addf %11, %12 : vector<4x32xf32>
    %14 = vector.shape_cast %6 : vector<1x128xf32> to vector<1x128xf32>
    %15 = vector.broadcast %14 : vector<1x128xf32> to vector<4x128xf32>
    %16 = arith.truncf %13 : vector<4x32xf32> to vector<4x32xbf16>
    %cst_12 = arith.constant dense<0.000000e+00> : vector<4x128xf32>
    %17 = tpu.matmul %16, %1, %cst_12 {dimension_numbers = #tpu.dot_dimension_numbers<[1], [0], [0], [1], [0, 0, 1, 1], [], []>} : vector<4x32xbf16>, vector<32x128xbf16>, vector<4x128xf32> -> vector<4x128xf32>
    %18 = arith.addf %17, %15 : vector<4x128xf32>
    %19 = vector.extract_strided_slice %18 {offsets = [0, 0], sizes = [4, 32], strides = [1, 1]} : vector<4x128xf32> to vector<4x32xf32>
    %20 = arith.negf %19 : vector<4x32xf32>
    %21 = math.exp %20 : vector<4x32xf32>
    %cst_13 = arith.constant 1.000000e+00 : f32
    %22 = vector.broadcast %cst_13 : f32 to vector<4x32xf32>
    %23 = arith.addf %22, %21 : vector<4x32xf32>
    %24 = arith.divf %22, %23 : vector<4x32xf32>
    %25 = vector.extract_strided_slice %18 {offsets = [0, 32], sizes = [4, 32], strides = [1, 1]} : vector<4x128xf32> to vector<4x32xf32>
    %26 = arith.negf %25 : vector<4x32xf32>
    %27 = math.exp %26 : vector<4x32xf32>
    %cst_14 = arith.constant 1.000000e+00 : f32
    %28 = vector.broadcast %cst_14 : f32 to vector<4x32xf32>
    %29 = arith.addf %28, %27 : vector<4x32xf32>
    %30 = arith.divf %28, %29 : vector<4x32xf32>
    %31 = vector.extract_strided_slice %18 {offsets = [0, 64], sizes = [4, 32], strides = [1, 1]} : vector<4x128xf32> to vector<4x32xf32>
    %32 = vector.extract_strided_slice %18 {offsets = [0, 96], sizes = [4, 32], strides = [1, 1]} : vector<4x128xf32> to vector<4x32xf32>
    %33 = arith.mulf %24, %32 : vector<4x32xf32>
    %34 = arith.addf %31, %33 : vector<4x32xf32>
    %35 = math.tanh %34 : vector<4x32xf32>
    %cst_15 = arith.constant 1.000000e+00 : f32
    %36 = vector.broadcast %cst_15 : f32 to vector<4x32xf32>
    %37 = arith.subf %36, %30 : vector<4x32xf32>
    %38 = arith.mulf %37, %35 : vector<4x32xf32>
    %39 = arith.mulf %30, %13 : vector<4x32xf32>
    %40 = arith.addf %38, %39 : vector<4x32xf32>
    %41 = arith.truncf %40 : vector<4x32xf32> to vector<4x32xbf16>
    %cst_16 = arith.constant dense<0.000000e+00> : vector<4x128xf32>
    %42 = tpu.matmul %41, %1, %cst_16 {dimension_numbers = #tpu.dot_dimension_numbers<[1], [0], [0], [1], [0, 0, 1, 1], [], []>} : vector<4x32xbf16>, vector<32x128xbf16>, vector<4x128xf32> -> vector<4x128xf32>
    %43 = arith.addf %42, %15 : vector<4x128xf32>
    %44 = vector.extract_strided_slice %43 {offsets = [0, 0], sizes = [4, 32], strides = [1, 1]} : vector<4x128xf32> to vector<4x32xf32>
    %45 = arith.negf %44 : vector<4x32xf32>
    %46 = math.exp %45 : vector<4x32xf32>
    %cst_17 = arith.constant 1.000000e+00 : f32
    %47 = vector.broadcast %cst_17 : f32 to vector<4x32xf32>
    %48 = arith.addf %47, %46 : vector<4x32xf32>
    %49 = arith.divf %47, %48 : vector<4x32xf32>
    %50 = vector.extract_strided_slice %43 {offsets = [0, 32], sizes = [4, 32], strides = [1, 1]} : vector<4x128xf32> to vector<4x32xf32>
    %51 = arith.negf %50 : vector<4x32xf32>
    %52 = math.exp %51 : vector<4x32xf32>
    %cst_18 = arith.constant 1.000000e+00 : f32
    %53 = vector.broadcast %cst_18 : f32 to vector<4x32xf32>
    %54 = arith.addf %53, %52 : vector<4x32xf32>
    %55 = arith.divf %53, %54 : vector<4x32xf32>
    %56 = vector.extract_strided_slice %43 {offsets = [0, 64], sizes = [4, 32], strides = [1, 1]} : vector<4x128xf32> to vector<4x32xf32>
    %57 = vector.extract_strided_slice %43 {offsets = [0, 96], sizes = [4, 32], strides = [1, 1]} : vector<4x128xf32> to vector<4x32xf32>
    %58 = arith.mulf %49, %57 : vector<4x32xf32>
    %59 = arith.addf %56, %58 : vector<4x32xf32>
    %60 = math.tanh %59 : vector<4x32xf32>
    %cst_19 = arith.constant 1.000000e+00 : f32
    %61 = vector.broadcast %cst_19 : f32 to vector<4x32xf32>
    %62 = arith.subf %61, %55 : vector<4x32xf32>
    %63 = arith.mulf %62, %60 : vector<4x32xf32>
    %64 = arith.mulf %55, %40 : vector<4x32xf32>
    %65 = arith.addf %63, %64 : vector<4x32xf32>
    %66 = arith.truncf %65 : vector<4x32xf32> to vector<4x32xbf16>
    %cst_20 = arith.constant dense<0.000000e+00> : vector<4x128xf32>
    %67 = tpu.matmul %66, %1, %cst_20 {dimension_numbers = #tpu.dot_dimension_numbers<[1], [0], [0], [1], [0, 0, 1, 1], [], []>} : vector<4x32xbf16>, vector<32x128xbf16>, vector<4x128xf32> -> vector<4x128xf32>
    %68 = arith.addf %67, %15 : vector<4x128xf32>
    %69 = vector.extract_strided_slice %68 {offsets = [0, 0], sizes = [4, 32], strides = [1, 1]} : vector<4x128xf32> to vector<4x32xf32>
    %70 = arith.negf %69 : vector<4x32xf32>
    %71 = math.exp %70 : vector<4x32xf32>
    %cst_21 = arith.constant 1.000000e+00 : f32
    %72 = vector.broadcast %cst_21 : f32 to vector<4x32xf32>
    %73 = arith.addf %72, %71 : vector<4x32xf32>
    %74 = arith.divf %72, %73 : vector<4x32xf32>
    %75 = vector.extract_strided_slice %68 {offsets = [0, 32], sizes = [4, 32], strides = [1, 1]} : vector<4x128xf32> to vector<4x32xf32>
    %76 = arith.negf %75 : vector<4x32xf32>
    %77 = math.exp %76 : vector<4x32xf32>
    %cst_22 = arith.constant 1.000000e+00 : f32
    %78 = vector.broadcast %cst_22 : f32 to vector<4x32xf32>
    %79 = arith.addf %78, %77 : vector<4x32xf32>
    %80 = arith.divf %78, %79 : vector<4x32xf32>
    %81 = vector.extract_strided_slice %68 {offsets = [0, 64], sizes = [4, 32], strides = [1, 1]} : vector<4x128xf32> to vector<4x32xf32>
    %82 = vector.extract_strided_slice %68 {offsets = [0, 96], sizes = [4, 32], strides = [1, 1]} : vector<4x128xf32> to vector<4x32xf32>
    %83 = arith.mulf %74, %82 : vector<4x32xf32>
    %84 = arith.addf %81, %83 : vector<4x32xf32>
    %85 = math.tanh %84 : vector<4x32xf32>
    %cst_23 = arith.constant 1.000000e+00 : f32
    %86 = vector.broadcast %cst_23 : f32 to vector<4x32xf32>
    %87 = arith.subf %86, %80 : vector<4x32xf32>
    %88 = arith.mulf %87, %85 : vector<4x32xf32>
    %89 = arith.mulf %80, %65 : vector<4x32xf32>
    %90 = arith.addf %88, %89 : vector<4x32xf32>
    %91 = arith.truncf %90 : vector<4x32xf32> to vector<4x32xbf16>
    %cst_24 = arith.constant dense<0.000000e+00> : vector<4x128xf32>
    %92 = tpu.matmul %91, %1, %cst_24 {dimension_numbers = #tpu.dot_dimension_numbers<[1], [0], [0], [1], [0, 0, 1, 1], [], []>} : vector<4x32xbf16>, vector<32x128xbf16>, vector<4x128xf32> -> vector<4x128xf32>
    %93 = arith.addf %92, %15 : vector<4x128xf32>
    %94 = vector.extract_strided_slice %93 {offsets = [0, 0], sizes = [4, 32], strides = [1, 1]} : vector<4x128xf32> to vector<4x32xf32>
    %95 = arith.negf %94 : vector<4x32xf32>
    %96 = math.exp %95 : vector<4x32xf32>
    %cst_25 = arith.constant 1.000000e+00 : f32
    %97 = vector.broadcast %cst_25 : f32 to vector<4x32xf32>
    %98 = arith.addf %97, %96 : vector<4x32xf32>
    %99 = arith.divf %97, %98 : vector<4x32xf32>
    %100 = vector.extract_strided_slice %93 {offsets = [0, 32], sizes = [4, 32], strides = [1, 1]} : vector<4x128xf32> to vector<4x32xf32>
    %101 = arith.negf %100 : vector<4x32xf32>
    %102 = math.exp %101 : vector<4x32xf32>
    %cst_26 = arith.constant 1.000000e+00 : f32
    %103 = vector.broadcast %cst_26 : f32 to vector<4x32xf32>
    %104 = arith.addf %103, %102 : vector<4x32xf32>
    %105 = arith.divf %103, %104 : vector<4x32xf32>
    %106 = vector.extract_strided_slice %93 {offsets = [0, 64], sizes = [4, 32], strides = [1, 1]} : vector<4x128xf32> to vector<4x32xf32>
    %107 = vector.extract_strided_slice %93 {offsets = [0, 96], sizes = [4, 32], strides = [1, 1]} : vector<4x128xf32> to vector<4x32xf32>
    %108 = arith.mulf %99, %107 : vector<4x32xf32>
    %109 = arith.addf %106, %108 : vector<4x32xf32>
    %110 = math.tanh %109 : vector<4x32xf32>
    %cst_27 = arith.constant 1.000000e+00 : f32
    %111 = vector.broadcast %cst_27 : f32 to vector<4x32xf32>
    %112 = arith.subf %111, %105 : vector<4x32xf32>
    %113 = arith.mulf %112, %110 : vector<4x32xf32>
    %114 = arith.mulf %105, %90 : vector<4x32xf32>
    %115 = arith.addf %113, %114 : vector<4x32xf32>
    %116 = arith.truncf %115 : vector<4x32xf32> to vector<4x32xbf16>
    %cst_28 = arith.constant dense<0.000000e+00> : vector<4x128xf32>
    %117 = tpu.matmul %116, %1, %cst_28 {dimension_numbers = #tpu.dot_dimension_numbers<[1], [0], [0], [1], [0, 0, 1, 1], [], []>} : vector<4x32xbf16>, vector<32x128xbf16>, vector<4x128xf32> -> vector<4x128xf32>
    %118 = arith.addf %117, %15 : vector<4x128xf32>
    %119 = vector.extract_strided_slice %118 {offsets = [0, 0], sizes = [4, 32], strides = [1, 1]} : vector<4x128xf32> to vector<4x32xf32>
    %120 = arith.negf %119 : vector<4x32xf32>
    %121 = math.exp %120 : vector<4x32xf32>
    %cst_29 = arith.constant 1.000000e+00 : f32
    %122 = vector.broadcast %cst_29 : f32 to vector<4x32xf32>
    %123 = arith.addf %122, %121 : vector<4x32xf32>
    %124 = arith.divf %122, %123 : vector<4x32xf32>
    %125 = vector.extract_strided_slice %118 {offsets = [0, 32], sizes = [4, 32], strides = [1, 1]} : vector<4x128xf32> to vector<4x32xf32>
    %126 = arith.negf %125 : vector<4x32xf32>
    %127 = math.exp %126 : vector<4x32xf32>
    %cst_30 = arith.constant 1.000000e+00 : f32
    %128 = vector.broadcast %cst_30 : f32 to vector<4x32xf32>
    %129 = arith.addf %128, %127 : vector<4x32xf32>
    %130 = arith.divf %128, %129 : vector<4x32xf32>
    %131 = vector.extract_strided_slice %118 {offsets = [0, 64], sizes = [4, 32], strides = [1, 1]} : vector<4x128xf32> to vector<4x32xf32>
    %132 = vector.extract_strided_slice %118 {offsets = [0, 96], sizes = [4, 32], strides = [1, 1]} : vector<4x128xf32> to vector<4x32xf32>
    %133 = arith.mulf %124, %132 : vector<4x32xf32>
    %134 = arith.addf %131, %133 : vector<4x32xf32>
    %135 = math.tanh %134 : vector<4x32xf32>
    %cst_31 = arith.constant 1.000000e+00 : f32
    %136 = vector.broadcast %cst_31 : f32 to vector<4x32xf32>
    %137 = arith.subf %136, %130 : vector<4x32xf32>
    %138 = arith.mulf %137, %135 : vector<4x32xf32>
    %139 = arith.mulf %130, %115 : vector<4x32xf32>
    %140 = arith.addf %138, %139 : vector<4x32xf32>
    %141 = arith.truncf %140 : vector<4x32xf32> to vector<4x32xbf16>
    %cst_32 = arith.constant dense<0.000000e+00> : vector<4x128xf32>
    %142 = tpu.matmul %141, %1, %cst_32 {dimension_numbers = #tpu.dot_dimension_numbers<[1], [0], [0], [1], [0, 0, 1, 1], [], []>} : vector<4x32xbf16>, vector<32x128xbf16>, vector<4x128xf32> -> vector<4x128xf32>
    %143 = arith.addf %142, %15 : vector<4x128xf32>
    %144 = vector.extract_strided_slice %143 {offsets = [0, 0], sizes = [4, 32], strides = [1, 1]} : vector<4x128xf32> to vector<4x32xf32>
    %145 = arith.negf %144 : vector<4x32xf32>
    %146 = math.exp %145 : vector<4x32xf32>
    %cst_33 = arith.constant 1.000000e+00 : f32
    %147 = vector.broadcast %cst_33 : f32 to vector<4x32xf32>
    %148 = arith.addf %147, %146 : vector<4x32xf32>
    %149 = arith.divf %147, %148 : vector<4x32xf32>
    %150 = vector.extract_strided_slice %143 {offsets = [0, 32], sizes = [4, 32], strides = [1, 1]} : vector<4x128xf32> to vector<4x32xf32>
    %151 = arith.negf %150 : vector<4x32xf32>
    %152 = math.exp %151 : vector<4x32xf32>
    %cst_34 = arith.constant 1.000000e+00 : f32
    %153 = vector.broadcast %cst_34 : f32 to vector<4x32xf32>
    %154 = arith.addf %153, %152 : vector<4x32xf32>
    %155 = arith.divf %153, %154 : vector<4x32xf32>
    %156 = vector.extract_strided_slice %143 {offsets = [0, 64], sizes = [4, 32], strides = [1, 1]} : vector<4x128xf32> to vector<4x32xf32>
    %157 = vector.extract_strided_slice %143 {offsets = [0, 96], sizes = [4, 32], strides = [1, 1]} : vector<4x128xf32> to vector<4x32xf32>
    %158 = arith.mulf %149, %157 : vector<4x32xf32>
    %159 = arith.addf %156, %158 : vector<4x32xf32>
    %160 = math.tanh %159 : vector<4x32xf32>
    %cst_35 = arith.constant 1.000000e+00 : f32
    %161 = vector.broadcast %cst_35 : f32 to vector<4x32xf32>
    %162 = arith.subf %161, %155 : vector<4x32xf32>
    %163 = arith.mulf %162, %160 : vector<4x32xf32>
    %164 = arith.mulf %155, %140 : vector<4x32xf32>
    %165 = arith.addf %163, %164 : vector<4x32xf32>
    %166 = arith.truncf %165 : vector<4x32xf32> to vector<4x32xbf16>
    %cst_36 = arith.constant dense<0.000000e+00> : vector<4x128xf32>
    %167 = tpu.matmul %166, %1, %cst_36 {dimension_numbers = #tpu.dot_dimension_numbers<[1], [0], [0], [1], [0, 0, 1, 1], [], []>} : vector<4x32xbf16>, vector<32x128xbf16>, vector<4x128xf32> -> vector<4x128xf32>
    %168 = arith.addf %167, %15 : vector<4x128xf32>
    %169 = vector.extract_strided_slice %168 {offsets = [0, 0], sizes = [4, 32], strides = [1, 1]} : vector<4x128xf32> to vector<4x32xf32>
    %170 = arith.negf %169 : vector<4x32xf32>
    %171 = math.exp %170 : vector<4x32xf32>
    %cst_37 = arith.constant 1.000000e+00 : f32
    %172 = vector.broadcast %cst_37 : f32 to vector<4x32xf32>
    %173 = arith.addf %172, %171 : vector<4x32xf32>
    %174 = arith.divf %172, %173 : vector<4x32xf32>
    %175 = vector.extract_strided_slice %168 {offsets = [0, 32], sizes = [4, 32], strides = [1, 1]} : vector<4x128xf32> to vector<4x32xf32>
    %176 = arith.negf %175 : vector<4x32xf32>
    %177 = math.exp %176 : vector<4x32xf32>
    %cst_38 = arith.constant 1.000000e+00 : f32
    %178 = vector.broadcast %cst_38 : f32 to vector<4x32xf32>
    %179 = arith.addf %178, %177 : vector<4x32xf32>
    %180 = arith.divf %178, %179 : vector<4x32xf32>
    %181 = vector.extract_strided_slice %168 {offsets = [0, 64], sizes = [4, 32], strides = [1, 1]} : vector<4x128xf32> to vector<4x32xf32>
    %182 = vector.extract_strided_slice %168 {offsets = [0, 96], sizes = [4, 32], strides = [1, 1]} : vector<4x128xf32> to vector<4x32xf32>
    %183 = arith.mulf %174, %182 : vector<4x32xf32>
    %184 = arith.addf %181, %183 : vector<4x32xf32>
    %185 = math.tanh %184 : vector<4x32xf32>
    %cst_39 = arith.constant 1.000000e+00 : f32
    %186 = vector.broadcast %cst_39 : f32 to vector<4x32xf32>
    %187 = arith.subf %186, %180 : vector<4x32xf32>
    %188 = arith.mulf %187, %185 : vector<4x32xf32>
    %189 = arith.mulf %180, %165 : vector<4x32xf32>
    %190 = arith.addf %188, %189 : vector<4x32xf32>
    %191 = arith.truncf %190 : vector<4x32xf32> to vector<4x32xbf16>
    %cst_40 = arith.constant dense<0.000000e+00> : vector<4x128xf32>
    %192 = tpu.matmul %191, %1, %cst_40 {dimension_numbers = #tpu.dot_dimension_numbers<[1], [0], [0], [1], [0, 0, 1, 1], [], []>} : vector<4x32xbf16>, vector<32x128xbf16>, vector<4x128xf32> -> vector<4x128xf32>
    %193 = arith.addf %192, %15 : vector<4x128xf32>
    %194 = vector.extract_strided_slice %193 {offsets = [0, 0], sizes = [4, 32], strides = [1, 1]} : vector<4x128xf32> to vector<4x32xf32>
    %195 = arith.negf %194 : vector<4x32xf32>
    %196 = math.exp %195 : vector<4x32xf32>
    %cst_41 = arith.constant 1.000000e+00 : f32
    %197 = vector.broadcast %cst_41 : f32 to vector<4x32xf32>
    %198 = arith.addf %197, %196 : vector<4x32xf32>
    %199 = arith.divf %197, %198 : vector<4x32xf32>
    %200 = vector.extract_strided_slice %193 {offsets = [0, 32], sizes = [4, 32], strides = [1, 1]} : vector<4x128xf32> to vector<4x32xf32>
    %201 = arith.negf %200 : vector<4x32xf32>
    %202 = math.exp %201 : vector<4x32xf32>
    %cst_42 = arith.constant 1.000000e+00 : f32
    %203 = vector.broadcast %cst_42 : f32 to vector<4x32xf32>
    %204 = arith.addf %203, %202 : vector<4x32xf32>
    %205 = arith.divf %203, %204 : vector<4x32xf32>
    %206 = vector.extract_strided_slice %193 {offsets = [0, 64], sizes = [4, 32], strides = [1, 1]} : vector<4x128xf32> to vector<4x32xf32>
    %207 = vector.extract_strided_slice %193 {offsets = [0, 96], sizes = [4, 32], strides = [1, 1]} : vector<4x128xf32> to vector<4x32xf32>
    %208 = arith.mulf %199, %207 : vector<4x32xf32>
    %209 = arith.addf %206, %208 : vector<4x32xf32>
    %210 = math.tanh %209 : vector<4x32xf32>
    %cst_43 = arith.constant 1.000000e+00 : f32
    %211 = vector.broadcast %cst_43 : f32 to vector<4x32xf32>
    %212 = arith.subf %211, %205 : vector<4x32xf32>
    %213 = arith.mulf %212, %210 : vector<4x32xf32>
    %214 = arith.mulf %205, %190 : vector<4x32xf32>
    %215 = arith.addf %213, %214 : vector<4x32xf32>
    %216 = tpu.concatenate %40, %65, %90, %115, %140, %165, %190, %215 in 0 : vector<4x32xf32>, vector<4x32xf32>, vector<4x32xf32>, vector<4x32xf32>, vector<4x32xf32>, vector<4x32xf32>, vector<4x32xf32>, vector<4x32xf32> -> vector<32x32xf32>
    %217 = arith.truncf %216 : vector<32x32xf32> to vector<32x32xbf16>
    %cst_44 = arith.constant dense<0.000000e+00> : vector<32x128xf32>
    %218 = tpu.matmul %217, %3, %cst_44 {dimension_numbers = #tpu.dot_dimension_numbers<[1], [0], [0], [1], [0, 0, 1, 1], [], []>} : vector<32x32xbf16>, vector<32x128xbf16>, vector<32x128xf32> -> vector<32x128xf32>
    %219 = vector.broadcast %7 : vector<1x128xf32> to vector<32x128xf32>
    %220 = arith.addf %218, %219 : vector<32x128xf32>
    %cst_45 = arith.constant 0.000000e+00 : f32
    %221 = vector.broadcast %cst_45 : f32 to vector<4x32xf32>
    %222 = arith.truncf %221 : vector<4x32xf32> to vector<4x32xbf16>
    %cst_46 = arith.constant dense<0.000000e+00> : vector<4x128xf32>
    %223 = tpu.matmul %222, %2, %cst_46 {dimension_numbers = #tpu.dot_dimension_numbers<[1], [0], [0], [1], [0, 0, 1, 1], [], []>} : vector<4x32xbf16>, vector<32x128xbf16>, vector<4x128xf32> -> vector<4x128xf32>
    %224 = vector.extract_strided_slice %220 {offsets = [0, 0], sizes = [4, 128], strides = [1, 1]} : vector<32x128xf32> to vector<4x128xf32>
    %225 = arith.addf %224, %223 : vector<4x128xf32>
    %226 = vector.extract_strided_slice %225 {offsets = [0, 0], sizes = [4, 32], strides = [1, 1]} : vector<4x128xf32> to vector<4x32xf32>
    %227 = arith.negf %226 : vector<4x32xf32>
    %228 = math.exp %227 : vector<4x32xf32>
    %cst_47 = arith.constant 1.000000e+00 : f32
    %229 = vector.broadcast %cst_47 : f32 to vector<4x32xf32>
    %230 = arith.addf %229, %228 : vector<4x32xf32>
    %231 = arith.divf %229, %230 : vector<4x32xf32>
    %232 = vector.extract_strided_slice %225 {offsets = [0, 32], sizes = [4, 32], strides = [1, 1]} : vector<4x128xf32> to vector<4x32xf32>
    %233 = arith.negf %232 : vector<4x32xf32>
    %234 = math.exp %233 : vector<4x32xf32>
    %cst_48 = arith.constant 1.000000e+00 : f32
    %235 = vector.broadcast %cst_48 : f32 to vector<4x32xf32>
    %236 = arith.addf %235, %234 : vector<4x32xf32>
    %237 = arith.divf %235, %236 : vector<4x32xf32>
    %238 = vector.extract_strided_slice %225 {offsets = [0, 64], sizes = [4, 32], strides = [1, 1]} : vector<4x128xf32> to vector<4x32xf32>
    %239 = vector.extract_strided_slice %225 {offsets = [0, 96], sizes = [4, 32], strides = [1, 1]} : vector<4x128xf32> to vector<4x32xf32>
    %240 = arith.mulf %231, %239 : vector<4x32xf32>
    %241 = arith.addf %238, %240 : vector<4x32xf32>
    %242 = math.tanh %241 : vector<4x32xf32>
    %cst_49 = arith.constant 1.000000e+00 : f32
    %243 = vector.broadcast %cst_49 : f32 to vector<4x32xf32>
    %244 = arith.subf %243, %237 : vector<4x32xf32>
    %245 = arith.mulf %244, %242 : vector<4x32xf32>
    %246 = arith.mulf %237, %221 : vector<4x32xf32>
    %247 = arith.addf %245, %246 : vector<4x32xf32>
    %248 = arith.truncf %247 : vector<4x32xf32> to vector<4x32xbf16>
    %cst_50 = arith.constant dense<0.000000e+00> : vector<4x128xf32>
    %249 = tpu.matmul %248, %2, %cst_50 {dimension_numbers = #tpu.dot_dimension_numbers<[1], [0], [0], [1], [0, 0, 1, 1], [], []>} : vector<4x32xbf16>, vector<32x128xbf16>, vector<4x128xf32> -> vector<4x128xf32>
    %250 = vector.extract_strided_slice %220 {offsets = [4, 0], sizes = [4, 128], strides = [1, 1]} : vector<32x128xf32> to vector<4x128xf32>
    %251 = arith.addf %250, %249 : vector<4x128xf32>
    %252 = vector.extract_strided_slice %251 {offsets = [0, 0], sizes = [4, 32], strides = [1, 1]} : vector<4x128xf32> to vector<4x32xf32>
    %253 = arith.negf %252 : vector<4x32xf32>
    %254 = math.exp %253 : vector<4x32xf32>
    %cst_51 = arith.constant 1.000000e+00 : f32
    %255 = vector.broadcast %cst_51 : f32 to vector<4x32xf32>
    %256 = arith.addf %255, %254 : vector<4x32xf32>
    %257 = arith.divf %255, %256 : vector<4x32xf32>
    %258 = vector.extract_strided_slice %251 {offsets = [0, 32], sizes = [4, 32], strides = [1, 1]} : vector<4x128xf32> to vector<4x32xf32>
    %259 = arith.negf %258 : vector<4x32xf32>
    %260 = math.exp %259 : vector<4x32xf32>
    %cst_52 = arith.constant 1.000000e+00 : f32
    %261 = vector.broadcast %cst_52 : f32 to vector<4x32xf32>
    %262 = arith.addf %261, %260 : vector<4x32xf32>
    %263 = arith.divf %261, %262 : vector<4x32xf32>
    %264 = vector.extract_strided_slice %251 {offsets = [0, 64], sizes = [4, 32], strides = [1, 1]} : vector<4x128xf32> to vector<4x32xf32>
    %265 = vector.extract_strided_slice %251 {offsets = [0, 96], sizes = [4, 32], strides = [1, 1]} : vector<4x128xf32> to vector<4x32xf32>
    %266 = arith.mulf %257, %265 : vector<4x32xf32>
    %267 = arith.addf %264, %266 : vector<4x32xf32>
    %268 = math.tanh %267 : vector<4x32xf32>
    %cst_53 = arith.constant 1.000000e+00 : f32
    %269 = vector.broadcast %cst_53 : f32 to vector<4x32xf32>
    %270 = arith.subf %269, %263 : vector<4x32xf32>
    %271 = arith.mulf %270, %268 : vector<4x32xf32>
    %272 = arith.mulf %263, %247 : vector<4x32xf32>
    %273 = arith.addf %271, %272 : vector<4x32xf32>
    %274 = arith.truncf %273 : vector<4x32xf32> to vector<4x32xbf16>
    %cst_54 = arith.constant dense<0.000000e+00> : vector<4x128xf32>
    %275 = tpu.matmul %274, %2, %cst_54 {dimension_numbers = #tpu.dot_dimension_numbers<[1], [0], [0], [1], [0, 0, 1, 1], [], []>} : vector<4x32xbf16>, vector<32x128xbf16>, vector<4x128xf32> -> vector<4x128xf32>
    %276 = vector.extract_strided_slice %220 {offsets = [8, 0], sizes = [4, 128], strides = [1, 1]} : vector<32x128xf32> to vector<4x128xf32>
    %277 = arith.addf %276, %275 : vector<4x128xf32>
    %278 = vector.extract_strided_slice %277 {offsets = [0, 0], sizes = [4, 32], strides = [1, 1]} : vector<4x128xf32> to vector<4x32xf32>
    %279 = arith.negf %278 : vector<4x32xf32>
    %280 = math.exp %279 : vector<4x32xf32>
    %cst_55 = arith.constant 1.000000e+00 : f32
    %281 = vector.broadcast %cst_55 : f32 to vector<4x32xf32>
    %282 = arith.addf %281, %280 : vector<4x32xf32>
    %283 = arith.divf %281, %282 : vector<4x32xf32>
    %284 = vector.extract_strided_slice %277 {offsets = [0, 32], sizes = [4, 32], strides = [1, 1]} : vector<4x128xf32> to vector<4x32xf32>
    %285 = arith.negf %284 : vector<4x32xf32>
    %286 = math.exp %285 : vector<4x32xf32>
    %cst_56 = arith.constant 1.000000e+00 : f32
    %287 = vector.broadcast %cst_56 : f32 to vector<4x32xf32>
    %288 = arith.addf %287, %286 : vector<4x32xf32>
    %289 = arith.divf %287, %288 : vector<4x32xf32>
    %290 = vector.extract_strided_slice %277 {offsets = [0, 64], sizes = [4, 32], strides = [1, 1]} : vector<4x128xf32> to vector<4x32xf32>
    %291 = vector.extract_strided_slice %277 {offsets = [0, 96], sizes = [4, 32], strides = [1, 1]} : vector<4x128xf32> to vector<4x32xf32>
    %292 = arith.mulf %283, %291 : vector<4x32xf32>
    %293 = arith.addf %290, %292 : vector<4x32xf32>
    %294 = math.tanh %293 : vector<4x32xf32>
    %cst_57 = arith.constant 1.000000e+00 : f32
    %295 = vector.broadcast %cst_57 : f32 to vector<4x32xf32>
    %296 = arith.subf %295, %289 : vector<4x32xf32>
    %297 = arith.mulf %296, %294 : vector<4x32xf32>
    %298 = arith.mulf %289, %273 : vector<4x32xf32>
    %299 = arith.addf %297, %298 : vector<4x32xf32>
    %300 = arith.truncf %299 : vector<4x32xf32> to vector<4x32xbf16>
    %cst_58 = arith.constant dense<0.000000e+00> : vector<4x128xf32>
    %301 = tpu.matmul %300, %2, %cst_58 {dimension_numbers = #tpu.dot_dimension_numbers<[1], [0], [0], [1], [0, 0, 1, 1], [], []>} : vector<4x32xbf16>, vector<32x128xbf16>, vector<4x128xf32> -> vector<4x128xf32>
    %302 = vector.extract_strided_slice %220 {offsets = [12, 0], sizes = [4, 128], strides = [1, 1]} : vector<32x128xf32> to vector<4x128xf32>
    %303 = arith.addf %302, %301 : vector<4x128xf32>
    %304 = vector.extract_strided_slice %303 {offsets = [0, 0], sizes = [4, 32], strides = [1, 1]} : vector<4x128xf32> to vector<4x32xf32>
    %305 = arith.negf %304 : vector<4x32xf32>
    %306 = math.exp %305 : vector<4x32xf32>
    %cst_59 = arith.constant 1.000000e+00 : f32
    %307 = vector.broadcast %cst_59 : f32 to vector<4x32xf32>
    %308 = arith.addf %307, %306 : vector<4x32xf32>
    %309 = arith.divf %307, %308 : vector<4x32xf32>
    %310 = vector.extract_strided_slice %303 {offsets = [0, 32], sizes = [4, 32], strides = [1, 1]} : vector<4x128xf32> to vector<4x32xf32>
    %311 = arith.negf %310 : vector<4x32xf32>
    %312 = math.exp %311 : vector<4x32xf32>
    %cst_60 = arith.constant 1.000000e+00 : f32
    %313 = vector.broadcast %cst_60 : f32 to vector<4x32xf32>
    %314 = arith.addf %313, %312 : vector<4x32xf32>
    %315 = arith.divf %313, %314 : vector<4x32xf32>
    %316 = vector.extract_strided_slice %303 {offsets = [0, 64], sizes = [4, 32], strides = [1, 1]} : vector<4x128xf32> to vector<4x32xf32>
    %317 = vector.extract_strided_slice %303 {offsets = [0, 96], sizes = [4, 32], strides = [1, 1]} : vector<4x128xf32> to vector<4x32xf32>
    %318 = arith.mulf %309, %317 : vector<4x32xf32>
    %319 = arith.addf %316, %318 : vector<4x32xf32>
    %320 = math.tanh %319 : vector<4x32xf32>
    %cst_61 = arith.constant 1.000000e+00 : f32
    %321 = vector.broadcast %cst_61 : f32 to vector<4x32xf32>
    %322 = arith.subf %321, %315 : vector<4x32xf32>
    %323 = arith.mulf %322, %320 : vector<4x32xf32>
    %324 = arith.mulf %315, %299 : vector<4x32xf32>
    %325 = arith.addf %323, %324 : vector<4x32xf32>
    %326 = arith.truncf %325 : vector<4x32xf32> to vector<4x32xbf16>
    %cst_62 = arith.constant dense<0.000000e+00> : vector<4x128xf32>
    %327 = tpu.matmul %326, %2, %cst_62 {dimension_numbers = #tpu.dot_dimension_numbers<[1], [0], [0], [1], [0, 0, 1, 1], [], []>} : vector<4x32xbf16>, vector<32x128xbf16>, vector<4x128xf32> -> vector<4x128xf32>
    %328 = vector.extract_strided_slice %220 {offsets = [16, 0], sizes = [4, 128], strides = [1, 1]} : vector<32x128xf32> to vector<4x128xf32>
    %329 = arith.addf %328, %327 : vector<4x128xf32>
    %330 = vector.extract_strided_slice %329 {offsets = [0, 0], sizes = [4, 32], strides = [1, 1]} : vector<4x128xf32> to vector<4x32xf32>
    %331 = arith.negf %330 : vector<4x32xf32>
    %332 = math.exp %331 : vector<4x32xf32>
    %cst_63 = arith.constant 1.000000e+00 : f32
    %333 = vector.broadcast %cst_63 : f32 to vector<4x32xf32>
    %334 = arith.addf %333, %332 : vector<4x32xf32>
    %335 = arith.divf %333, %334 : vector<4x32xf32>
    %336 = vector.extract_strided_slice %329 {offsets = [0, 32], sizes = [4, 32], strides = [1, 1]} : vector<4x128xf32> to vector<4x32xf32>
    %337 = arith.negf %336 : vector<4x32xf32>
    %338 = math.exp %337 : vector<4x32xf32>
    %cst_64 = arith.constant 1.000000e+00 : f32
    %339 = vector.broadcast %cst_64 : f32 to vector<4x32xf32>
    %340 = arith.addf %339, %338 : vector<4x32xf32>
    %341 = arith.divf %339, %340 : vector<4x32xf32>
    %342 = vector.extract_strided_slice %329 {offsets = [0, 64], sizes = [4, 32], strides = [1, 1]} : vector<4x128xf32> to vector<4x32xf32>
    %343 = vector.extract_strided_slice %329 {offsets = [0, 96], sizes = [4, 32], strides = [1, 1]} : vector<4x128xf32> to vector<4x32xf32>
    %344 = arith.mulf %335, %343 : vector<4x32xf32>
    %345 = arith.addf %342, %344 : vector<4x32xf32>
    %346 = math.tanh %345 : vector<4x32xf32>
    %cst_65 = arith.constant 1.000000e+00 : f32
    %347 = vector.broadcast %cst_65 : f32 to vector<4x32xf32>
    %348 = arith.subf %347, %341 : vector<4x32xf32>
    %349 = arith.mulf %348, %346 : vector<4x32xf32>
    %350 = arith.mulf %341, %325 : vector<4x32xf32>
    %351 = arith.addf %349, %350 : vector<4x32xf32>
    %352 = arith.truncf %351 : vector<4x32xf32> to vector<4x32xbf16>
    %cst_66 = arith.constant dense<0.000000e+00> : vector<4x128xf32>
    %353 = tpu.matmul %352, %2, %cst_66 {dimension_numbers = #tpu.dot_dimension_numbers<[1], [0], [0], [1], [0, 0, 1, 1], [], []>} : vector<4x32xbf16>, vector<32x128xbf16>, vector<4x128xf32> -> vector<4x128xf32>
    %354 = vector.extract_strided_slice %220 {offsets = [20, 0], sizes = [4, 128], strides = [1, 1]} : vector<32x128xf32> to vector<4x128xf32>
    %355 = arith.addf %354, %353 : vector<4x128xf32>
    %356 = vector.extract_strided_slice %355 {offsets = [0, 0], sizes = [4, 32], strides = [1, 1]} : vector<4x128xf32> to vector<4x32xf32>
    %357 = arith.negf %356 : vector<4x32xf32>
    %358 = math.exp %357 : vector<4x32xf32>
    %cst_67 = arith.constant 1.000000e+00 : f32
    %359 = vector.broadcast %cst_67 : f32 to vector<4x32xf32>
    %360 = arith.addf %359, %358 : vector<4x32xf32>
    %361 = arith.divf %359, %360 : vector<4x32xf32>
    %362 = vector.extract_strided_slice %355 {offsets = [0, 32], sizes = [4, 32], strides = [1, 1]} : vector<4x128xf32> to vector<4x32xf32>
    %363 = arith.negf %362 : vector<4x32xf32>
    %364 = math.exp %363 : vector<4x32xf32>
    %cst_68 = arith.constant 1.000000e+00 : f32
    %365 = vector.broadcast %cst_68 : f32 to vector<4x32xf32>
    %366 = arith.addf %365, %364 : vector<4x32xf32>
    %367 = arith.divf %365, %366 : vector<4x32xf32>
    %368 = vector.extract_strided_slice %355 {offsets = [0, 64], sizes = [4, 32], strides = [1, 1]} : vector<4x128xf32> to vector<4x32xf32>
    %369 = vector.extract_strided_slice %355 {offsets = [0, 96], sizes = [4, 32], strides = [1, 1]} : vector<4x128xf32> to vector<4x32xf32>
    %370 = arith.mulf %361, %369 : vector<4x32xf32>
    %371 = arith.addf %368, %370 : vector<4x32xf32>
    %372 = math.tanh %371 : vector<4x32xf32>
    %cst_69 = arith.constant 1.000000e+00 : f32
    %373 = vector.broadcast %cst_69 : f32 to vector<4x32xf32>
    %374 = arith.subf %373, %367 : vector<4x32xf32>
    %375 = arith.mulf %374, %372 : vector<4x32xf32>
    %376 = arith.mulf %367, %351 : vector<4x32xf32>
    %377 = arith.addf %375, %376 : vector<4x32xf32>
    %378 = arith.truncf %377 : vector<4x32xf32> to vector<4x32xbf16>
    %cst_70 = arith.constant dense<0.000000e+00> : vector<4x128xf32>
    %379 = tpu.matmul %378, %2, %cst_70 {dimension_numbers = #tpu.dot_dimension_numbers<[1], [0], [0], [1], [0, 0, 1, 1], [], []>} : vector<4x32xbf16>, vector<32x128xbf16>, vector<4x128xf32> -> vector<4x128xf32>
    %380 = vector.extract_strided_slice %220 {offsets = [24, 0], sizes = [4, 128], strides = [1, 1]} : vector<32x128xf32> to vector<4x128xf32>
    %381 = arith.addf %380, %379 : vector<4x128xf32>
    %382 = vector.extract_strided_slice %381 {offsets = [0, 0], sizes = [4, 32], strides = [1, 1]} : vector<4x128xf32> to vector<4x32xf32>
    %383 = arith.negf %382 : vector<4x32xf32>
    %384 = math.exp %383 : vector<4x32xf32>
    %cst_71 = arith.constant 1.000000e+00 : f32
    %385 = vector.broadcast %cst_71 : f32 to vector<4x32xf32>
    %386 = arith.addf %385, %384 : vector<4x32xf32>
    %387 = arith.divf %385, %386 : vector<4x32xf32>
    %388 = vector.extract_strided_slice %381 {offsets = [0, 32], sizes = [4, 32], strides = [1, 1]} : vector<4x128xf32> to vector<4x32xf32>
    %389 = arith.negf %388 : vector<4x32xf32>
    %390 = math.exp %389 : vector<4x32xf32>
    %cst_72 = arith.constant 1.000000e+00 : f32
    %391 = vector.broadcast %cst_72 : f32 to vector<4x32xf32>
    %392 = arith.addf %391, %390 : vector<4x32xf32>
    %393 = arith.divf %391, %392 : vector<4x32xf32>
    %394 = vector.extract_strided_slice %381 {offsets = [0, 64], sizes = [4, 32], strides = [1, 1]} : vector<4x128xf32> to vector<4x32xf32>
    %395 = vector.extract_strided_slice %381 {offsets = [0, 96], sizes = [4, 32], strides = [1, 1]} : vector<4x128xf32> to vector<4x32xf32>
    %396 = arith.mulf %387, %395 : vector<4x32xf32>
    %397 = arith.addf %394, %396 : vector<4x32xf32>
    %398 = math.tanh %397 : vector<4x32xf32>
    %cst_73 = arith.constant 1.000000e+00 : f32
    %399 = vector.broadcast %cst_73 : f32 to vector<4x32xf32>
    %400 = arith.subf %399, %393 : vector<4x32xf32>
    %401 = arith.mulf %400, %398 : vector<4x32xf32>
    %402 = arith.mulf %393, %377 : vector<4x32xf32>
    %403 = arith.addf %401, %402 : vector<4x32xf32>
    %404 = arith.truncf %403 : vector<4x32xf32> to vector<4x32xbf16>
    %cst_74 = arith.constant dense<0.000000e+00> : vector<4x128xf32>
    %405 = tpu.matmul %404, %2, %cst_74 {dimension_numbers = #tpu.dot_dimension_numbers<[1], [0], [0], [1], [0, 0, 1, 1], [], []>} : vector<4x32xbf16>, vector<32x128xbf16>, vector<4x128xf32> -> vector<4x128xf32>
    %406 = vector.extract_strided_slice %220 {offsets = [28, 0], sizes = [4, 128], strides = [1, 1]} : vector<32x128xf32> to vector<4x128xf32>
    %407 = arith.addf %406, %405 : vector<4x128xf32>
    %408 = vector.extract_strided_slice %407 {offsets = [0, 0], sizes = [4, 32], strides = [1, 1]} : vector<4x128xf32> to vector<4x32xf32>
    %409 = arith.negf %408 : vector<4x32xf32>
    %410 = math.exp %409 : vector<4x32xf32>
    %cst_75 = arith.constant 1.000000e+00 : f32
    %411 = vector.broadcast %cst_75 : f32 to vector<4x32xf32>
    %412 = arith.addf %411, %410 : vector<4x32xf32>
    %413 = arith.divf %411, %412 : vector<4x32xf32>
    %414 = vector.extract_strided_slice %407 {offsets = [0, 32], sizes = [4, 32], strides = [1, 1]} : vector<4x128xf32> to vector<4x32xf32>
    %415 = arith.negf %414 : vector<4x32xf32>
    %416 = math.exp %415 : vector<4x32xf32>
    %cst_76 = arith.constant 1.000000e+00 : f32
    %417 = vector.broadcast %cst_76 : f32 to vector<4x32xf32>
    %418 = arith.addf %417, %416 : vector<4x32xf32>
    %419 = arith.divf %417, %418 : vector<4x32xf32>
    %420 = vector.extract_strided_slice %407 {offsets = [0, 64], sizes = [4, 32], strides = [1, 1]} : vector<4x128xf32> to vector<4x32xf32>
    %421 = vector.extract_strided_slice %407 {offsets = [0, 96], sizes = [4, 32], strides = [1, 1]} : vector<4x128xf32> to vector<4x32xf32>
    %422 = arith.mulf %413, %421 : vector<4x32xf32>
    %423 = arith.addf %420, %422 : vector<4x32xf32>
    %424 = math.tanh %423 : vector<4x32xf32>
    %cst_77 = arith.constant 1.000000e+00 : f32
    %425 = vector.broadcast %cst_77 : f32 to vector<4x32xf32>
    %426 = arith.subf %425, %419 : vector<4x32xf32>
    %427 = arith.mulf %426, %424 : vector<4x32xf32>
    %428 = arith.mulf %419, %403 : vector<4x32xf32>
    %429 = arith.addf %427, %428 : vector<4x32xf32>
    %430 = tpu.concatenate %247, %273, %299, %325, %351, %377, %403, %429 in 0 : vector<4x32xf32>, vector<4x32xf32>, vector<4x32xf32>, vector<4x32xf32>, vector<4x32xf32>, vector<4x32xf32>, vector<4x32xf32>, vector<4x32xf32> -> vector<32x32xf32>
    %431 = arith.truncf %430 : vector<32x32xf32> to vector<32x32xbf16>
    %cst_78 = arith.constant dense<0.000000e+00> : vector<32x128xf32>
    %432 = tpu.matmul %431, %4, %cst_78 {dimension_numbers = #tpu.dot_dimension_numbers<[1], [0], [0], [1], [0, 0, 1, 1], [], []>} : vector<32x32xbf16>, vector<32x128xbf16>, vector<32x128xf32> -> vector<32x128xf32>
    %433 = vector.broadcast %8 : vector<1x128xf32> to vector<32x128xf32>
    %434 = arith.addf %432, %433 : vector<32x128xf32>
    %c0_79 = arith.constant 0 : index
    %c0_80 = arith.constant 0 : index
    %435 = vector.load %arg3[%c0_79, %c0_80] : memref<32x128xf32, #tpu.memory_space<vmem>>, vector<32x128xf32>
    tpu.vector_store %arg3[%c0_79, %c0_80], %434 {strides = array<i32>} : memref<32x128xf32, #tpu.memory_space<vmem>>, vector<32x128xf32>,
    return
  }
}

</mosaic_0001>

<bundles_post_ra>
// kernel: tpu_custom_call.1
= control target key start
LH: loop header
LB: loop body
LE: loop exit
PB: predicated region body
PF: predicated region fallthrough
CT: control target
= control target key end

     0   :  { %8 = vsyncpa [#allocation3], 0  ;;  %s1800_s0 = inlined_call_operand.hbm [shape: f32[4,32], index: 0, kind: input, shape index: {}]   ;;  %s1801_s1 = inlined_call_operand.hbm [shape: bf16[160,128], index: 1, kind: input, shape index: {}]   ;;  %s1802_s2 = inlined_call_operand.hbm [shape: f32[4,128], index: 2, kind: input, shape index: {}]   ;;  %s1803_s3 = inlined_call_operand.hbm [shape: f32[32,128], index: 3, kind: output, shape index: {}]  }
   0x1   :  { %9 = vsyncpa [#allocation6], 0  ;;  %s26_s14 = sshll.u32 %s1801_s1, 4  ;;  %s27_s14 = int_to_ptr.hbm [resolvable:$true] %s26_s14 }
   0x2   :  { %10 = vsyncpa [#allocation4], 0  ;;  %s1545_s15 = smov [#allocation5]   ;;  %s16_s19 = sshll.u32 %s1800_s0, 4  ;;  %s17_s19 = int_to_ptr.hbm [resolvable:$true] %s16_s19 }
   0x3   :  { %s28_s16 = sshll.u32 %s1545_s15, 4  ;;  %s1546_s20 = smov 64   ;;  %s29_s16 = int_to_ptr.vmem [resolvable:$true] %s28_s16 }
   0x4   :  { %s1547_s21 = smov 4   ;;  %s1548_s22 = smov [#allocation2]  }
   0x5   :  { %34 = dma.hbm_to_vmem [thread:$0]  %s27_s14, 1280, %s29_s16, [#allocation6], %s1546_s20, %s1546_s20, %s1547_s21  }
   0x6   :  { %s18_s23 = sshll.u32 %s1548_s22, 4  ;;  %s40_s1 = sshll.u32 %s1802_s2, 4  ;;  %s19_s23 = int_to_ptr.vmem [resolvable:$true] %s18_s23  ;;  %s41_s1 = int_to_ptr.hbm [resolvable:$true] %s40_s1 }
   0x7   :  { %21 = dma.hbm_to_vmem [thread:$0]  %s17_s19, 64, %s19_s23, [#allocation3]  }
   0x8   :  { %s1549_s26 = smov [#allocation7]  }
   0x9   :  { %s42_s27 = sshll.u32 %s1549_s26, 4  ;;  %s43_s27 = int_to_ptr.vmem [resolvable:$true] %s42_s27 }
   0xa   :  { %45 = dma.hbm_to_vmem [thread:$0]  %s41_s1, 64, %s43_s27, [#allocation6]  }
   0xb   :  { %1539 = dma.done.wait [#allocation3], 64  }
   0xc   :  { %1540 = vsyncadd [#allocation3], 4294967232 }
   0xd   :  { %1541 = dma.done.wait [#allocation6], 1344  }
   0xe   :  { %1542 = vsyncadd [#allocation6], 4294965952  ;;  %v1323_v0 = vld [vmem:[#allocation5 + $0x8] sm:$0xff]  ;;  %v1322_v1 = vld [vmem:[#allocation5] sm:$0xff]  ;;  %vm98_vm0 = vcmask 261120   ;;  %s1550_s0 = smov 32  }
   0xf   :  { %v83_v2 = vld [vmem:[#allocation2] sm:$0xf]  ;;  %108 = vmatpush.bf16.msra.mxu0 %v1323_v0  ;;  %v1324_v5 = vld [vmem:[#allocation5 + $0x10] sm:$0xff]  ;;  %s1551_s2 = smov 96   ;;  %s1553_s28 = smov [#allocation8]  }
  0x10   :  { %v1325_v3 = vld [vmem:[#allocation5 + $0x18] sm:$0xff]  ;;  %v84_v4 = vpack.c.bf16 %v83_v2, %v83_v2  ;;  %v1343_v6 = vld [vmem:[#allocation7] ss:$0 sm:$0xff]  ;;  %v1589_v11 = vld [vmem:[#allocation7 + $0x1] ss:$0 sm:$0xff]  ;;  %s1230_s29 = sshll.u32 %s1553_s28, 4  ;;  %s1231_s29 = int_to_ptr.vmem [resolvable:$true] %s1230_s29 }
  0x11   :  { %138 = vmatpush.bf16.msra.mxu1 %v1325_v3  ;;  %200 = vmatpush.bf16.msra.mxu2 %v1325_v3  ;;  %s1232_s5 = sshll.u32 %s1803_s3, 4  ;;  %s1554_s6 = smov 128   ;;  %s1233_s5 = int_to_ptr.hbm [resolvable:$true] %s1232_s5 }
  0x12   :  { %258 = vmatpush.bf16.msra.mxu3 %v1325_v3  ;;  %s1555_s7 = smov 8  }
  0x13   :  { %109 = vmatpush.bf16.msra.mxu0 %v1322_v1 }
  0x15   :  { %139 = vmatpush.bf16.msra.mxu1 %v1324_v5  ;;  %201 = vmatpush.bf16.msra.mxu2 %v1324_v5 }
  0x16   :  { %1254 = vmatmul.msk.bf16.vlgmr.msra.gmra.mxu0 %vm98_vm0, %v84_v4  ;;  %259 = vmatpush.bf16.msra.mxu3 %v1324_v5 }
  0x17   :  { %316 = vmatpush.bf16.msrb.mxu0 %v1325_v3 }
  0x19   :  { %374 = vmatpush.bf16.msrb.mxu1 %v1325_v3  ;;  %432 = vmatpush.bf16.msrb.mxu2 %v1325_v3 }
  0x1a   :  { %490 = vmatpush.bf16.msrb.mxu3 %v1325_v3 }
  0x1b   :  { %317 = vmatpush.bf16.msrb.mxu0 %v1324_v5 }
  0x1d   :  { %375 = vmatpush.bf16.msrb.mxu1 %v1324_v5  ;;  %433 = vmatpush.bf16.msrb.mxu2 %v1324_v5 }
  0x1e   :  { %491 = vmatpush.bf16.msrb.mxu3 %v1324_v5 }
  0x1f   :  { %548 = vmatpush.bf16.msra.mxu0 %v1325_v3 }
  0x23   :  { %549 = vmatpush.bf16.msra.mxu0 %v1324_v5 }
  0x93   :  { %v111_v7 = vpop.f32.mrf.mxu0 }
  0x94   :  { %v112_v8 = vadd.f32 %v1343_v6, %v111_v7 }
  0x96   :  { %v116_v9 = vpack.c.bf16 %v112_v8, %v112_v8 }
  0x98   :  { %1263 = vmatmul.msk.bf16.vlgmr.msra.gmra.mxu1 %vm98_vm0, %v116_v9 }
  0x9b   :  { %v113_v10 = vpop.f32.mrf.mxu0 }
 0x115   :  { %v141_v12 = vpop.f32.mrf.mxu1 }
 0x116   :  { %v142_v13 = vadd.f32 %v1589_v11, %v141_v12 }
 0x118   :  { %165 = vrot.lane.b32.xlu0 %v142_v13, %s1550_s0  ;;  %v1264_v15 = vmul.f32 -1.442695, %v142_v13 }
 0x11a   :  { %1347 = vpow2.f32 %v1264_v15 }
 0x11d   :  { %v143_v14 = vpop.f32.mrf.mxu1 }
 0x120   :  { %v1348_v16 = vpop.eup %1347 }
 0x121   :  { %v148_v17 = vadd.f32 1.0, %v1348_v16 }
 0x123   :  { %1349 = vrcp.f32 %v148_v17  ;;  %v160_v23 = vand.u32 2147483648, %v148_v17  ;;  %vm154_vm2 = vweird.f32 %v148_v17  ;;  %v158_v24 = vand.u32 2147483647, %v148_v17 }
 0x125   :  { %v161_v26 = vor.u32 1.1754944e-38, %v160_v23  ;;  %vm159_vm4 = vcmp.eq.f32.partialorder %v158_v24, 8.507059e+37 }
 0x129   :  { %v1350_v18 = vpop.eup %1349 }
 0x12a   :  { %v150_v19 = vmul.f32 %v1350_v18, %v148_v17  ;;  %vm155_vm1 = vweird.f32 %v1350_v18 }
 0x12b   :  { %vm156_vm3 = vmor %vm154_vm2, %vm155_vm1 }
 0x12c   :  { %v151_v20 = vsub.f32 1.0, %v150_v19 }
 0x12e   :  { %v152_v21 = vmul.f32 %v1350_v18, %v151_v20 }
 0x130   :  { %v153_v22 = vadd.f32 %v1350_v18, %v152_v21 }
 0x132   :  { %v157_v25 = vsel %vm156_vm3, %v1350_v18, %v153_v22 }
 0x133   :  { %v162_v28 = vsel %vm159_vm4, %v161_v26, %v157_v25 }
 0x134   :  { %v175_v34 = vsub.f32 1.0, %v162_v28 }
 0x18a   :  { %v166_v27 = vpop.permute.xlu0 %165 }
 0x18b   :  { %v168_v29 = vmul.f32 %v166_v27, %v162_v28 }
 0x18d   :  { %170 = vrot.lane.b32.xlu0 %v168_v29, %s1546_s20 }
 0x1ff   :  { %v171_v30 = vpop.permute.xlu0 %170 }
 0x200   :  { %v173_v31 = vadd.f32 %v171_v30, %v142_v13 }
 0x202   :  { %1351 = vtanh.f32 %v173_v31 }
 0x208   :  { %v1352_v32 = vpop.eup %1351 }
 0x209   :  { %177 = vrot.lane.b32.xlu1 %v1352_v32, %s1551_s2 }
 0x211   :  { %182 = vrot.lane.b32.xlu1 %v112_v8, %s1550_s0 }
 0x27b   :  { %v178_v33 = vpop.permute.xlu1 %177 }
 0x27c   :  { %v180_v36 = vmul.f32 %v178_v33, %v175_v34 }
 0x283   :  { %v183_v35 = vpop.permute.xlu1 %182 }
 0x284   :  { %v185_v37 = vmul.f32 %v183_v35, %v162_v28 }
 0x286   :  { %v1596_v38 = vadd.f32 %v185_v37, %v180_v36 }
 0x288   :  { %v187_v39 = vpack.c.bf16 %v1596_v38, %v1596_v38 }
 0x28a   :  { %189 = vrot.lane.b32.xlu2 %v187_v39, %s1551_s2 }
 0x2e4   :  { %v190_v40 = vpop.permute.xlu2 %189 }
 0x2e5   :  { %1265 = vmatmul.msk.bf16.vlgmr.msra.gmra.mxu2 %vm98_vm0, %v190_v40 }
 0x368   :  { %v203_v41 = vpop.f32.mrf.mxu2 }
 0x369   :  { %v204_v42 = vadd.f32 %v1589_v11, %v203_v41 }
 0x36b   :  { %227 = vrot.lane.b32.xlu2 %v204_v42, %s1550_s0  ;;  %v1266_v44 = vmul.f32 -1.442695, %v204_v42 }
 0x36d   :  { %1353 = vpow2.f32 %v1266_v44 }
 0x370   :  { %v205_v43 = vpop.f32.mrf.mxu2 }
 0x373   :  { %v1354_v45 = vpop.eup %1353 }
 0x374   :  { %v210_v46 = vadd.f32 1.0, %v1354_v45 }
 0x376   :  { %1355 = vrcp.f32 %v210_v46  ;;  %v222_v52 = vand.u32 2147483648, %v210_v46  ;;  %vm216_vm6 = vweird.f32 %v210_v46  ;;  %v220_v53 = vand.u32 2147483647, %v210_v46 }
 0x378   :  { %v223_v55 = vor.u32 1.1754944e-38, %v222_v52  ;;  %vm221_vm8 = vcmp.eq.f32.partialorder %v220_v53, 8.507059e+37 }
 0x37c   :  { %v1356_v47 = vpop.eup %1355 }
 0x37d   :  { %v212_v48 = vmul.f32 %v1356_v47, %v210_v46  ;;  %vm217_vm5 = vweird.f32 %v1356_v47 }
 0x37e   :  { %vm218_vm7 = vmor %vm216_vm6, %vm217_vm5  ;;  %vm605_vm6 = vcmask 1043456  }
 0x37f   :  { %v213_v49 = vsub.f32 1.0, %v212_v48 }
 0x381   :  { %v214_v50 = vmul.f32 %v1356_v47, %v213_v49 }
 0x383   :  { %v215_v51 = vadd.f32 %v1356_v47, %v214_v50 }
 0x385   :  { %v219_v54 = vsel %vm218_vm7, %v1356_v47, %v215_v51 }
 0x386   :  { %v224_v57 = vsel %vm221_vm8, %v223_v55, %v219_v54 }
 0x387   :  { %v237_v62 = vsub.f32 1.0, %v224_v57  ;;  %v243_v0 = vmul.f32 %v224_v57, %v1596_v38 }
 0x3c5   :  { %v228_v56 = vpop.permute.xlu2 %227 }
 0x3c6   :  { %v230_v58 = vmul.f32 %v228_v56, %v224_v57 }
 0x3c8   :  { %232 = vrot.lane.b32.xlu0 %v230_v58, %s1546_s20 }
 0x43a   :  { %v233_v59 = vpop.permute.xlu0 %232 }
 0x43b   :  { %v235_v60 = vadd.f32 %v233_v59, %v204_v42 }
 0x43d   :  { %1357 = vtanh.f32 %v235_v60 }
 0x443   :  { %v1358_v61 = vpop.eup %1357 }
 0x444   :  { %239 = vrot.lane.b32.xlu1 %v1358_v61, %s1551_s2 }
 0x4b6   :  { %v240_v63 = vpop.permute.xlu1 %239 }
 0x4b7   :  { %v242_v1 = vmul.f32 %v240_v63, %v237_v62 }
 0x4b9   :  { %v1607_v2 = vadd.f32 %v243_v0, %v242_v1 }
 0x4bb   :  { %v245_v3 = vpack.c.bf16 %v1607_v2, %v1607_v2 }
 0x4bd   :  { %247 = vrot.lane.b32.xlu2 %v245_v3, %s1551_s2 }
 0x517   :  { %v248_v4 = vpop.permute.xlu2 %247 }
 0x518   :  { %1267 = vmatmul.msk.bf16.vlgmr.msra.gmra.mxu3 %vm98_vm0, %v248_v4 }
 0x59b   :  { %v261_v5 = vpop.f32.mrf.mxu3 }
 0x59c   :  { %v262_v6 = vadd.f32 %v1589_v11, %v261_v5 }
 0x59e   :  { %285 = vrot.lane.b32.xlu0 %v262_v6, %s1550_s0  ;;  %v1268_v8 = vmul.f32 -1.442695, %v262_v6 }
 0x5a0   :  { %1359 = vpow2.f32 %v1268_v8 }
 0x5a3   :  { %v263_v7 = vpop.f32.mrf.mxu3 }
 0x5a6   :  { %v1360_v9 = vpop.eup %1359 }
 0x5a7   :  { %v268_v10 = vadd.f32 1.0, %v1360_v9 }
 0x5a9   :  { %1361 = vrcp.f32 %v268_v10  ;;  %v280_v17 = vand.u32 2147483648, %v268_v10  ;;  %vm274_vm10 = vweird.f32 %v268_v10  ;;  %v278_v18 = vand.u32 2147483647, %v268_v10 }
 0x5ab   :  { %v281_v20 = vor.u32 1.1754944e-38, %v280_v17  ;;  %vm279_vm12 = vcmp.eq.f32.partialorder %v278_v18, 8.507059e+37 }
 0x5af   :  { %v1362_v12 = vpop.eup %1361 }
 0x5b0   :  { %v270_v13 = vmul.f32 %v1362_v12, %v268_v10  ;;  %vm275_vm9 = vweird.f32 %v1362_v12 }
 0x5b1   :  { %vm276_vm11 = vmor %vm274_vm10, %vm275_vm9 }
 0x5b2   :  { %v271_v14 = vsub.f32 1.0, %v270_v13 }
 0x5b4   :  { %v272_v15 = vmul.f32 %v1362_v12, %v271_v14 }
 0x5b6   :  { %v273_v16 = vadd.f32 %v1362_v12, %v272_v15 }
 0x5b8   :  { %v277_v19 = vsel %vm276_vm11, %v1362_v12, %v273_v16 }
 0x5b9   :  { %v282_v22 = vsel %vm279_vm12, %v281_v20, %v277_v19  ;;  %v594_v20 = vrot.slane %v1607_v2, 4 }
 0x5ba   :  { %v295_v27 = vsub.f32 1.0, %v282_v22  ;;  %v301_v29 = vmul.f32 %v282_v22, %v1607_v2 }
 0x610   :  { %v286_v21 = vpop.permute.xlu0 %285 }
 0x611   :  { %v288_v23 = vmul.f32 %v286_v21, %v282_v22  ;;  %v606_v22 = vsel %vm605_vm6, %v1596_v38, %v594_v20 }
 0x613   :  { %290 = vrot.lane.b32.xlu1 %v288_v23, %s1546_s20 }
 0x685   :  { %v291_v24 = vpop.permute.xlu1 %290 }
 0x686   :  { %v293_v25 = vadd.f32 %v291_v24, %v262_v6  ;;  %v1329_v24 = vld [vmem:[#allocation5 + $0x28] sm:$0xff] }
 0x687   :  { %643 = vmatpush.bf16.msra.mxu1 %v1329_v24 }
 0x688   :  { %1363 = vtanh.f32 %v293_v25  ;;  %v1328_v25 = vld [vmem:[#allocation5 + $0x20] sm:$0xff] }
 0x68b   :  { %644 = vmatpush.bf16.msra.mxu1 %v1328_v25 }
 0x68e   :  { %v1364_v26 = vpop.eup %1363 }
 0x68f   :  { %297 = vrot.lane.b32.xlu2 %v1364_v26, %s1551_s2 }
 0x6e9   :  { %v298_v28 = vpop.permute.xlu2 %297 }
 0x6ea   :  { %v300_v30 = vmul.f32 %v298_v28, %v295_v27 }
 0x6ec   :  { %v1618_v31 = vadd.f32 %v301_v29, %v300_v30 }
 0x6ee   :  { %v303_v32 = vpack.c.bf16 %v1618_v31, %v1618_v31 }
 0x6f0   :  { %305 = vrot.lane.b32.xlu0 %v303_v32, %s1551_s2 }
 0x762   :  { %v306_v33 = vpop.permute.xlu0 %305 }
 0x763   :  { %1269 = vmatmul.msk.bf16.vlgmr.msrb.gmra.mxu0 %vm98_vm0, %v306_v33 }
 0x7e0   :  { %v319_v34 = vpop.f32.mrf.mxu0 }
 0x7e1   :  { %v320_v35 = vadd.f32 %v1589_v11, %v319_v34  ;;  %v1647_v34 = vld [vmem:[#allocation5 + $0x38] sm:$0xff] }
 0x7e2   :  { %677 = vmatpush.bf16.msra.mxu2 %v1647_v34  ;;  %736 = vmatpush.bf16.msra.mxu3 %v1647_v34 }
 0x7e3   :  { %343 = vrot.lane.b32.xlu1 %v320_v35, %s1550_s0  ;;  %v1270_v37 = vmul.f32 -1.442695, %v320_v35  ;;  %802 = vmatpush.bf16.msrb.mxu0 %v1647_v34 }
 0x7e5   :  { %1365 = vpow2.f32 %v1270_v37  ;;  %v1552_v37 = vmov 0  }
 0x7e8   :  { %v321_v36 = vpop.f32.mrf.mxu0 }
 0x7eb   :  { %v1366_v39 = vpop.eup %1365 }
 0x7ec   :  { %v326_v40 = vadd.f32 1.0, %v1366_v39 }
 0x7ee   :  { %1367 = vrcp.f32 %v326_v40  ;;  %v338_v46 = vand.u32 2147483648, %v326_v40  ;;  %vm332_vm14 = vweird.f32 %v326_v40  ;;  %v336_v47 = vand.u32 2147483647, %v326_v40 }
 0x7f0   :  { %v339_v49 = vor.u32 1.1754944e-38, %v338_v46  ;;  %vm337_vm1 = vcmp.eq.f32.partialorder %v336_v47, 8.507059e+37 }
 0x7f4   :  { %v1368_v41 = vpop.eup %1367 }
 0x7f5   :  { %v328_v42 = vmul.f32 %v1368_v41, %v326_v40  ;;  %vm333_vm13 = vweird.f32 %v1368_v41 }
 0x7f6   :  { %vm334_vm15 = vmor %vm332_vm14, %vm333_vm13 }
 0x7f7   :  { %v329_v43 = vsub.f32 1.0, %v328_v42  ;;  %v1666_v42 = vld [vmem:[#allocation7 + $0x2] ss:$0 sm:$0xff] }
 0x7f9   :  { %v330_v44 = vmul.f32 %v1368_v41, %v329_v43 }
 0x7fb   :  { %v331_v45 = vadd.f32 %v1368_v41, %v330_v44 }
 0x7fd   :  { %v335_v48 = vsel %vm334_vm15, %v1368_v41, %v331_v45 }
 0x7fe   :  { %v340_v51 = vsel %vm337_vm1, %v339_v49, %v335_v48 }
 0x7ff   :  { %v353_v56 = vsub.f32 1.0, %v340_v51  ;;  %v359_v58 = vmul.f32 %v340_v51, %v1618_v31 }
 0x855   :  { %v344_v50 = vpop.permute.xlu1 %343 }
 0x856   :  { %v346_v52 = vmul.f32 %v344_v50, %v340_v51 }
 0x858   :  { %348 = vrot.lane.b32.xlu2 %v346_v52, %s1546_s20 }
 0x8b2   :  { %v349_v53 = vpop.permute.xlu2 %348 }
 0x8b3   :  { %v351_v54 = vadd.f32 %v349_v53, %v320_v35  ;;  %v1650_v35 = vld [vmem:[#allocation5 + $0x30] sm:$0xff] }
 0x8b4   :  { %678 = vmatpush.bf16.msra.mxu2 %v1650_v35  ;;  %737 = vmatpush.bf16.msra.mxu3 %v1650_v35 }
 0x8b5   :  { %1369 = vtanh.f32 %v351_v54  ;;  %803 = vmatpush.bf16.msrb.mxu0 %v1650_v35 }
 0x8bb   :  { %v1370_v55 = vpop.eup %1369 }
 0x8bc   :  { %355 = vrot.lane.b32.xlu0 %v1370_v55, %s1551_s2 }
 0x92e   :  { %v356_v57 = vpop.permute.xlu0 %355 }
 0x92f   :  { %v358_v59 = vmul.f32 %v356_v57, %v353_v56 }
 0x931   :  { %v360_v60 = vadd.f32 %v359_v58, %v358_v59 }
 0x933   :  { %v361_v61 = vpack.c.bf16 %v360_v60, %v360_v60  ;;  %v597_v19 = vrot.slane %v360_v60, 4 }
 0x935   :  { %363 = vrot.lane.b32.xlu1 %v361_v61, %s1551_s2  ;;  %v607_v21 = vsel %vm605_vm6, %v1618_v31, %v597_v19 }
 0x936   :  { %v610_v23 = vpack.c.bf16 %v607_v21, %v606_v22 }
 0x9a7   :  { %v364_v62 = vpop.permute.xlu1 %363 }
 0x9a8   :  { %1271 = vmatmul.msk.bf16.vlgmr.msrb.gmra.mxu1 %vm98_vm0, %v364_v62 }
 0x9a9   :  { %1058 = vmatpush.bf16.msrb.mxu1 %v1647_v34 }
 0x9ad   :  { %1059 = vmatpush.bf16.msrb.mxu1 %v1650_v35 }
 0xa25   :  { %v377_v63 = vpop.f32.mrf.mxu1 }
 0xa26   :  { %v378_v0 = vadd.f32 %v1589_v11, %v377_v63 }
 0xa28   :  { %401 = vrot.lane.b32.xlu2 %v378_v0, %s1550_s0  ;;  %v1272_v3 = vmul.f32 -1.442695, %v378_v0 }
 0xa2a   :  { %1371 = vpow2.f32 %v1272_v3 }
 0xa2d   :  { %v379_v1 = vpop.f32.mrf.mxu1 }
 0xa30   :  { %v1372_v4 = vpop.eup %1371 }
 0xa31   :  { %v384_v5 = vadd.f32 1.0, %v1372_v4 }
 0xa33   :  { %1373 = vrcp.f32 %v384_v5  ;;  %v396_v12 = vand.u32 2147483648, %v384_v5  ;;  %vm390_vm3 = vweird.f32 %v384_v5  ;;  %v394_v13 = vand.u32 2147483647, %v384_v5 }
 0xa35   :  { %v397_v15 = vor.u32 1.1754944e-38, %v396_v12  ;;  %vm395_vm5 = vcmp.eq.f32.partialorder %v394_v13, 8.507059e+37 }
 0xa39   :  { %v1374_v6 = vpop.eup %1373 }
 0xa3a   :  { %v386_v7 = vmul.f32 %v1374_v6, %v384_v5  ;;  %vm391_vm2 = vweird.f32 %v1374_v6 }
 0xa3b   :  { %vm392_vm4 = vmor %vm390_vm3, %vm391_vm2 }
 0xa3c   :  { %v387_v8 = vsub.f32 1.0, %v386_v7 }
 0xa3e   :  { %v388_v9 = vmul.f32 %v1374_v6, %v387_v8 }
 0xa40   :  { %v389_v10 = vadd.f32 %v1374_v6, %v388_v9 }
 0xa42   :  { %v393_v14 = vsel %vm392_vm4, %v1374_v6, %v389_v10 }
 0xa43   :  { %v398_v17 = vsel %vm395_vm5, %v397_v15, %v393_v14 }
 0xa44   :  { %v411_v2 = vsub.f32 1.0, %v398_v17  ;;  %v417_v31 = vmul.f32 %v398_v17, %v360_v60 }
 0xa82   :  { %v402_v16 = vpop.permute.xlu2 %401 }
 0xa83   :  { %v404_v18 = vmul.f32 %v402_v16, %v398_v17 }
 0xa85   :  { %406 = vrot.lane.b32.xlu0 %v404_v18, %s1546_s20 }
 0xa8d   :  { %615 = vrot.lane.b32.xlu0 %v610_v23, %s1551_s2 }
 0xaf7   :  { %v407_v26 = vpop.permute.xlu0 %406 }
 0xaf8   :  { %v409_v27 = vadd.f32 %v407_v26, %v378_v0 }
 0xafa   :  { %1375 = vtanh.f32 %v409_v27 }
 0xaff   :  { %v616_v28 = vpop.permute.xlu0 %615 }
 0xb00   :  { %v1376_v29 = vpop.eup %1375  ;;  %1287 = vmatmul.msk.bf16.vlgmr.msra.gmra.mxu1 %vm98_vm0, %v616_v28 }
 0xb01   :  { %413 = vrot.lane.b32.xlu1 %v1376_v29, %s1551_s2 }
 0xb73   :  { %v414_v30 = vpop.permute.xlu1 %413 }
 0xb74   :  { %v416_v38 = vmul.f32 %v414_v30, %v411_v2 }
 0xb76   :  { %v1642_v32 = vadd.f32 %v417_v31, %v416_v38 }
 0xb78   :  { %v419_v33 = vpack.c.bf16 %v1642_v32, %v1642_v32 }
 0xb7a   :  { %421 = vrot.lane.b32.xlu2 %v419_v33, %s1551_s2 }
 0xb7d   :  { %v646_v43 = vpop.f32.mrf.mxu1 }
 0xb7e   :  { %v1669_v44 = vadd.f32 %v1666_v42, %v646_v43 }
 0xbd4   :  { %v422_v36 = vpop.permute.xlu2 %421 }
 0xbd5   :  { %1273 = vmatmul.msk.bf16.vlgmr.msrb.gmra.mxu2 %vm98_vm0, %v422_v36 }
 0xbd6   :  { %864 = vmatpush.bf16.msrb.mxu2 %v1647_v34 }
 0xbda   :  { %865 = vmatpush.bf16.msrb.mxu2 %v1650_v35 }
 0xbe5   :  { %679 = vmatmul.bf16.vlgmr.msra.gmra.mxu2 %v1552_v37 }
 0xbe6   :  { %1120 = vmatpush.bf16.msra.mxu2 %v1647_v34 }
 0xbea   :  { %1121 = vmatpush.bf16.msra.mxu2 %v1650_v35 }
 0xc58   :  { %v435_v39 = vpop.f32.mrf.mxu2 }
 0xc59   :  { %v436_v40 = vadd.f32 %v1589_v11, %v435_v39 }
 0xc5b   :  { %459 = vrot.lane.b32.xlu1 %v436_v40, %s1550_s0  ;;  %v1274_v49 = vmul.f32 -1.442695, %v436_v40 }
 0xc60   :  { %v437_v41 = vpop.f32.mrf.mxu2 }
 0xc68   :  { %v680_v45 = vpop.f32.mrf.mxu2 }
 0xc69   :  { %v684_v46 = vadd.f32 %v680_v45, %v1669_v44 }
 0xc6b   :  { %705 = vrot.lane.b32.xlu2 %v684_v46, %s1550_s0  ;;  %v1297_v48 = vmul.f32 -1.442695, %v684_v46 }
 0xc6d   :  { %1377 = vpow2.f32 %v1297_v48 }
 0xc6e   :  { %1379 = vpow2.f32 %v1274_v49 }
 0xc70   :  { %v682_v47 = vpop.f32.mrf.mxu2 }
 0xc73   :  { %v1378_v50 = vpop.eup %1377 }
 0xc74   :  { %v688_v51 = vadd.f32 1.0, %v1378_v50  ;;  %v1380_v52 = vpop.eup %1379 }
 0xc75   :  { %v442_v53 = vadd.f32 1.0, %v1380_v52 }
 0xc76   :  { %1381 = vrcp.f32 %v688_v51  ;;  %v700_v62 = vand.u32 2147483648, %v688_v51  ;;  %vm694_vm8 = vweird.f32 %v688_v51  ;;  %v698_v63 = vand.u32 2147483647, %v688_v51 }
 0xc77   :  { %1383 = vrcp.f32 %v442_v53  ;;  %v454_v8 = vand.u32 2147483648, %v442_v53  ;;  %vm448_vm12 = vweird.f32 %v442_v53  ;;  %v452_v9 = vand.u32 2147483647, %v442_v53 }
 0xc78   :  { %v701_v3 = vor.u32 1.1754944e-38, %v700_v62  ;;  %vm699_vm10 = vcmp.eq.f32.partialorder %v698_v63, 8.507059e+37 }
 0xc79   :  { %v455_v12 = vor.u32 1.1754944e-38, %v454_v8  ;;  %vm453_vm14 = vcmp.eq.f32.partialorder %v452_v9, 8.507059e+37 }
 0xc7c   :  { %v1382_v54 = vpop.eup %1381 }
 0xc7d   :  { %v690_v55 = vmul.f32 %v1382_v54, %v688_v51  ;;  %v1384_v57 = vpop.eup %1383  ;;  %vm695_vm7 = vweird.f32 %v1382_v54 }
 0xc7e   :  { %v444_v59 = vmul.f32 %v1384_v57, %v442_v53  ;;  %vm696_vm9 = vmor %vm694_vm8, %vm695_vm7  ;;  %vm449_vm11 = vweird.f32 %v1384_v57 }
 0xc7f   :  { %v691_v56 = vsub.f32 1.0, %v690_v55  ;;  %vm450_vm13 = vmor %vm448_vm12, %vm449_vm11 }
 0xc80   :  { %v445_v61 = vsub.f32 1.0, %v444_v59 }
 0xc81   :  { %v692_v58 = vmul.f32 %v1382_v54, %v691_v56 }
 0xc82   :  { %v446_v1 = vmul.f32 %v1384_v57, %v445_v61 }
 0xc83   :  { %v693_v60 = vadd.f32 %v1382_v54, %v692_v58 }
 0xc84   :  { %v447_v7 = vadd.f32 %v1384_v57, %v446_v1 }
 0xc85   :  { %v697_v0 = vsel %vm696_vm9, %v1382_v54, %v693_v60 }
 0xc86   :  { %v702_v5 = vsel %vm699_vm10, %v701_v3, %v697_v0  ;;  %v451_v10 = vsel %vm450_vm13, %v1384_v57, %v447_v7 }
 0xc87   :  { %v456_v14 = vsel %vm453_vm14, %v455_v12, %v451_v10  ;;  %v715_v28 = vsub.f32 1.0, %v702_v5  ;;  %v721_v2 = vmul.f32 0.0, %v702_v5 }
 0xc88   :  { %v469_v22 = vsub.f32 1.0, %v456_v14  ;;  %v475_v24 = vmul.f32 %v456_v14, %v1642_v32 }
 0xcc5   :  { %v706_v4 = vpop.permute.xlu2 %705 }
 0xcc6   :  { %v708_v6 = vmul.f32 %v706_v4, %v702_v5 }
 0xcc8   :  { %710 = vrot.lane.b32.xlu1 %v708_v6, %s1546_s20 }
 0xccd   :  { %v460_v13 = vpop.permute.xlu1 %459 }
 0xcce   :  { %v462_v15 = vmul.f32 %v460_v13, %v456_v14 }
 0xcd0   :  { %464 = vrot.lane.b32.xlu0 %v462_v15, %s1546_s20 }
 0xd3a   :  { %v711_v16 = vpop.permute.xlu1 %710 }
 0xd3b   :  { %v713_v17 = vadd.f32 %v711_v16, %v684_v46 }
 0xd3d   :  { %1385 = vtanh.f32 %v713_v17 }
 0xd42   :  { %v465_v18 = vpop.permute.xlu0 %464 }
 0xd43   :  { %v1386_v19 = vpop.eup %1385  ;;  %v467_v20 = vadd.f32 %v465_v18, %v436_v40 }
 0xd44   :  { %717 = vrot.lane.b32.xlu0 %v1386_v19, %s1551_s2 }
 0xd45   :  { %1387 = vtanh.f32 %v467_v20 }
 0xd4b   :  { %v1388_v21 = vpop.eup %1387 }
 0xd4c   :  { %471 = vrot.lane.b32.xlu2 %v1388_v21, %s1551_s2 }
 0xda6   :  { %v472_v23 = vpop.permute.xlu2 %471 }
 0xda7   :  { %v474_v25 = vmul.f32 %v472_v23, %v469_v22 }
 0xda9   :  { %v1678_v26 = vadd.f32 %v475_v24, %v474_v25 }
 0xdab   :  { %v477_v27 = vpack.c.bf16 %v1678_v26, %v1678_v26 }
 0xdad   :  { %479 = vrot.lane.b32.xlu1 %v477_v27, %s1551_s2 }
 0xdb6   :  { %v718_v29 = vpop.permute.xlu0 %717 }
 0xdb7   :  { %v720_v30 = vmul.f32 %v718_v29, %v715_v28 }
 0xdb9   :  { %v1683_v31 = vadd.f32 %v721_v2, %v720_v30 }
 0xdbb   :  { %v723_v38 = vpack.c.bf16 %v1683_v31, %v1683_v31  ;;  %v784_v28 = vrot.slane %v1683_v31, 4 }
 0xdbd   :  { %725 = vrot.lane.b32.xlu2 %v723_v38, %s1551_s2 }
 0xe17   :  { %v726_v36 = vpop.permute.xlu2 %725 }
 0xe1f   :  { %v480_v33 = vpop.permute.xlu1 %479 }
 0xe20   :  { %1275 = vmatmul.msk.bf16.vlgmr.msrb.gmra.mxu3 %vm98_vm0, %v480_v33 }
 0xe21   :  { %930 = vmatpush.bf16.msrb.mxu3 %v1647_v34 }
 0xe25   :  { %931 = vmatpush.bf16.msrb.mxu3 %v1650_v35 }
 0xe30   :  { %1298 = vmatmul.msk.bf16.vlgmr.msra.gmra.mxu3 %vm98_vm0, %v726_v36 }
 0xea3   :  { %v493_v37 = vpop.f32.mrf.mxu3 }
 0xea4   :  { %v494_v39 = vadd.f32 %v1589_v11, %v493_v37 }
 0xea6   :  { %517 = vrot.lane.b32.xlu0 %v494_v39, %s1550_s0  ;;  %v1276_v47 = vmul.f32 -1.442695, %v494_v39 }
 0xea8   :  { %1389 = vpow2.f32 %v1276_v47 }
 0xeab   :  { %v495_v40 = vpop.f32.mrf.mxu3 }
 0xeae   :  { %v1390_v48 = vpop.eup %1389 }
 0xeaf   :  { %v500_v49 = vadd.f32 1.0, %v1390_v48 }
 0xeb1   :  { %1391 = vrcp.f32 %v500_v49  ;;  %vm506_vm1 = vweird.f32 %v500_v49  ;;  %v510_v58 = vand.u32 2147483647, %v500_v49 }
 0xeb3   :  { %v739_v41 = vpop.f32.mrf.mxu3  ;;  %vm511_vm3 = vcmp.eq.f32.partialorder %v510_v58, 8.507059e+37 }
 0xeb4   :  { %v744_v43 = vrot.slane %v739_v41, 4 }
 0xeb6   :  { %v746_v45 = vadd.f32 %v744_v43, %v1669_v44  ;;  %v512_v44 = vand.u32 2147483648, %v500_v49  ;;  %v648_v43 = vpop.f32.mrf.mxu1 }
 0xeb7   :  { %v1392_v51 = vpop.eup %1391 }
 0xeb8   :  { %767 = vrot.lane.b32.xlu1 %v746_v45, %s1550_s0  ;;  %v1299_v50 = vmul.f32 -1.442695, %v746_v45  ;;  %v502_v52 = vmul.f32 %v1392_v51, %v500_v49  ;;  %vm507_vm15 = vweird.f32 %v1392_v51  ;;  %v513_v61 = vor.u32 1.1754944e-38, %v512_v44 }
 0xeb9   :  { %vm508_vm2 = vmor %vm506_vm1, %vm507_vm15 }
 0xeba   :  { %1393 = vpow2.f32 %v1299_v50  ;;  %v503_v54 = vsub.f32 1.0, %v502_v52 }
 0xebb   :  { %v741_v46 = vpop.f32.mrf.mxu3 }
 0xebc   :  { %v504_v56 = vmul.f32 %v1392_v51, %v503_v54 }
 0xebe   :  { %v505_v57 = vadd.f32 %v1392_v51, %v504_v56 }
 0xec0   :  { %v1394_v53 = vpop.eup %1393  ;;  %v509_v60 = vsel %vm508_vm2, %v1392_v51, %v505_v57 }
 0xec1   :  { %v750_v55 = vadd.f32 1.0, %v1394_v53  ;;  %v514_v63 = vsel %vm511_vm3, %v513_v61, %v509_v60 }
 0xec2   :  { %v527_v20 = vsub.f32 1.0, %v514_v63  ;;  %v533_v22 = vmul.f32 %v514_v63, %v1678_v26 }
 0xec3   :  { %1395 = vrcp.f32 %v750_v55  ;;  %v762_v6 = vand.u32 2147483648, %v750_v55  ;;  %vm756_vm5 = vweird.f32 %v750_v55  ;;  %v760_v7 = vand.u32 2147483647, %v750_v55 }
 0xec5   :  { %v763_v9 = vor.u32 1.1754944e-38, %v762_v6  ;;  %vm761_vm8 = vcmp.eq.f32.partialorder %v760_v7, 8.507059e+37 }
 0xec9   :  { %v1396_v59 = vpop.eup %1395 }
 0xeca   :  { %v752_v62 = vmul.f32 %v1396_v59, %v750_v55  ;;  %vm757_vm4 = vweird.f32 %v1396_v59 }
 0xecb   :  { %vm758_vm7 = vmor %vm756_vm5, %vm757_vm4 }
 0xecc   :  { %v753_v3 = vsub.f32 1.0, %v752_v62 }
 0xece   :  { %v754_v4 = vmul.f32 %v1396_v59, %v753_v3 }
 0xed0   :  { %v755_v5 = vadd.f32 %v1396_v59, %v754_v4 }
 0xed2   :  { %v759_v8 = vsel %vm758_vm7, %v1396_v59, %v755_v5 }
 0xed3   :  { %v764_v12 = vsel %vm761_vm8, %v763_v9, %v759_v8 }
 0xed4   :  { %v777_v27 = vsub.f32 1.0, %v764_v12  ;;  %v786_v2 = vmul.f32 %v784_v28, %v764_v12 }
 0xf18   :  { %v518_v0 = vpop.permute.xlu0 %517 }
 0xf19   :  { %v520_v1 = vmul.f32 %v518_v0, %v514_v63 }
 0xf1b   :  { %522 = vrot.lane.b32.xlu2 %v520_v1, %s1546_s20 }
 0xf2a   :  { %v768_v10 = vpop.permute.xlu1 %767 }
 0xf2b   :  { %v770_v13 = vmul.f32 %v768_v10, %v764_v12 }
 0xf2d   :  { %772 = vrot.lane.b32.xlu0 %v770_v13, %s1546_s20 }
 0xf75   :  { %v523_v14 = vpop.permute.xlu2 %522 }
 0xf76   :  { %v525_v15 = vadd.f32 %v523_v14, %v494_v39 }
 0xf78   :  { %1397 = vtanh.f32 %v525_v15 }
 0xf7e   :  { %v1398_v16 = vpop.eup %1397 }
 0xf7f   :  { %529 = vrot.lane.b32.xlu1 %v1398_v16, %s1551_s2 }
 0xf9f   :  { %v773_v17 = vpop.permute.xlu0 %772 }
 0xfa0   :  { %v775_v18 = vadd.f32 %v773_v17, %v746_v45  ;;  %v649_v45 = vadd.f32 %v1666_v42, %v648_v43 }
 0xfa2   :  { %1399 = vtanh.f32 %v775_v18 }
 0xfa8   :  { %v1400_v19 = vpop.eup %1399 }
 0xfa9   :  { %779 = vrot.lane.b32.xlu2 %v1400_v19, %s1551_s2 }
 0xff1   :  { %v530_v21 = vpop.permute.xlu1 %529 }
 0xff2   :  { %v532_v23 = vmul.f32 %v530_v21, %v527_v20 }
 0xff4   :  { %v1701_v24 = vadd.f32 %v533_v22, %v532_v23 }
 0xff6   :  { %v535_v25 = vpack.c.bf16 %v1701_v24, %v1701_v24 }
 0xff8   :  { %537 = vrot.lane.b32.xlu0 %v535_v25, %s1551_s2 }
0x1003   :  { %v780_v29 = vpop.permute.xlu2 %779 }
0x1004   :  { %v782_v30 = vmul.f32 %v780_v29, %v777_v27 }
0x1006   :  { %v1707_v38 = vadd.f32 %v786_v2, %v782_v30 }
0x1008   :  { %v788_v33 = vpack.c.bf16 %v1707_v38, %v1707_v38  ;;  %v847_v58 = vrot.slane %v1707_v38, 4 }
0x100a   :  { %v790_v36 = vrot.slane %v788_v33, 2 }
0x100c   :  { %791 = vrot.lane.b32.xlu1 %v790_v36, %s1551_s2 }
0x106a   :  { %v538_v37 = vpop.permute.xlu0 %537 }
0x106b   :  { %1277 = vmatmul.msk.bf16.vlgmr.msra.gmra.mxu0 %vm98_vm0, %v538_v37 }
0x106c   :  { %992 = vmatpush.bf16.msra.mxu0 %v1647_v34 }
0x1070   :  { %993 = vmatpush.bf16.msra.mxu0 %v1650_v35 }
0x107e   :  { %v792_v39 = vpop.permute.xlu1 %791 }
0x107f   :  { %1300 = vmatmul.msk.bf16.vlgmr.msrb.gmra.mxu0 %vm98_vm0, %v792_v39 }
0x10e8   :  { %v551_v40 = vpop.f32.mrf.mxu0 }
0x10e9   :  { %v552_v3 = vadd.f32 %v1589_v11, %v551_v40 }
0x10eb   :  { %v1278_v10 = vmul.f32 -1.442695, %v552_v3 }
0x10f0   :  { %v553_v41 = vpop.f32.mrf.mxu0 }
0x10fc   :  { %v805_v46 = vpop.f32.mrf.mxu0 }
0x10fd   :  { %v809_v47 = vadd.f32 %v805_v46, %v649_v45 }
0x10ff   :  { %v1301_v48 = vmul.f32 -1.442695, %v809_v47  ;;  %830 = vrot.lane.b32.xlu2 %v809_v47, %s1550_s0 }
0x1101   :  { %1401 = vpow2.f32 %v1301_v48 }
0x1104   :  { %v807_v49 = vpop.f32.mrf.mxu0 }
0x1107   :  { %v1402_v50 = vpop.eup %1401 }
0x1108   :  { %v813_v51 = vadd.f32 1.0, %v1402_v50 }
0x110a   :  { %1403 = vrcp.f32 %v813_v51  ;;  %v825_v53 = vand.u32 2147483648, %v813_v51  ;;  %v823_v55 = vand.u32 2147483647, %v813_v51  ;;  %vm819_vm10 = vweird.f32 %v813_v51 }
0x110c   :  { %v826_v57 = vor.u32 1.1754944e-38, %v825_v53  ;;  %vm824_vm12 = vcmp.eq.f32.partialorder %v823_v55, 8.507059e+37 }
0x1110   :  { %v1404_v34 = vpop.eup %1403 }
0x1111   :  { %v815_v35 = vmul.f32 %v1404_v34, %v813_v51  ;;  %vm820_vm9 = vweird.f32 %v1404_v34 }
0x1112   :  { %vm821_vm11 = vmor %vm819_vm10, %vm820_vm9 }
0x1113   :  { %v816_v52 = vsub.f32 1.0, %v815_v35 }
0x1115   :  { %v817_v54 = vmul.f32 %v1404_v34, %v816_v52 }
0x1117   :  { %v818_v56 = vadd.f32 %v1404_v34, %v817_v54 }
0x1119   :  { %v822_v44 = vsel %vm821_vm11, %v1404_v34, %v818_v56 }
0x111a   :  { %v827_v59 = vsel %vm824_vm12, %v826_v57, %v822_v44 }
0x111b   :  { %v849_v60 = vmul.f32 %v847_v58, %v827_v59  ;;  %v840_v4 = vsub.f32 1.0, %v827_v59 }
0x1159   :  { %v831_v61 = vpop.permute.xlu2 %830 }
0x115a   :  { %v833_v62 = vmul.f32 %v831_v61, %v827_v59  ;;  %v600_v59 = vrot.slane %v1678_v26, 4  ;;  %v1745_v26 = vsel %vm605_vm6, %v1683_v31, %v1707_v38 }
0x115c   :  { %835 = vrot.lane.b32.xlu0 %v833_v62, %s1546_s20  ;;  %v608_v62 = vsel %vm605_vm6, %v1642_v32, %v600_v59 }
0x11ce   :  { %v836_v63 = vpop.permute.xlu0 %835 }
0x11cf   :  { %v838_v0 = vadd.f32 %v836_v63, %v809_v47 }
0x11d1   :  { %1405 = vtanh.f32 %v838_v0 }
0x11d2   :  { %1407 = vpow2.f32 %v1278_v10 }
0x11d7   :  { %v1406_v1 = vpop.eup %1405 }
0x11d8   :  { %842 = vrot.lane.b32.xlu1 %v1406_v1, %s1551_s2  ;;  %v1408_v12 = vpop.eup %1407 }
0x11d9   :  { %v558_v13 = vadd.f32 1.0, %v1408_v12 }
0x11db   :  { %1409 = vrcp.f32 %v558_v13  ;;  %v570_v21 = vand.u32 2147483648, %v558_v13  ;;  %vm564_vm14 = vweird.f32 %v558_v13  ;;  %v568_v22 = vand.u32 2147483647, %v558_v13 }
0x11dd   :  { %v571_v27 = vor.u32 1.1754944e-38, %v570_v21  ;;  %vm569_vm1 = vcmp.eq.f32.partialorder %v568_v22, 8.507059e+37 }
0x11e0   :  { %575 = vrot.lane.b32.xlu1 %v552_v3, %s1550_s0 }
0x11e1   :  { %v1410_v11 = vpop.eup %1409 }
0x11e2   :  { %v560_v14 = vmul.f32 %v1410_v11, %v558_v13  ;;  %vm565_vm13 = vweird.f32 %v1410_v11 }
0x11e3   :  { %vm566_vm15 = vmor %vm564_vm14, %vm565_vm13 }
0x11e4   :  { %v561_v15 = vsub.f32 1.0, %v560_v14 }
0x11e6   :  { %v562_v16 = vmul.f32 %v1410_v11, %v561_v15 }
0x11e8   :  { %v563_v19 = vadd.f32 %v1410_v11, %v562_v16 }
0x11ea   :  { %v567_v23 = vsel %vm566_vm15, %v1410_v11, %v563_v19 }
0x11eb   :  { %v572_v29 = vsel %vm569_vm1, %v571_v27, %v567_v23 }
0x11ec   :  { %v585_v56 = vsub.f32 1.0, %v572_v29  ;;  %v591_v44 = vmul.f32 %v572_v29, %v1701_v24 }
0x124a   :  { %v843_v5 = vpop.permute.xlu1 %842 }
0x124b   :  { %v845_v6 = vmul.f32 %v843_v5, %v840_v4 }
0x124d   :  { %v1723_v7 = vadd.f32 %v849_v60, %v845_v6 }
0x124f   :  { %v851_v8 = vpack.c.bf16 %v1723_v7, %v1723_v7 }
0x1251   :  { %853 = vrot.lane.b32.xlu2 %v851_v8, %s1551_s2 }
0x1252   :  { %v576_v25 = vpop.permute.xlu1 %575 }
0x1253   :  { %v578_v2 = vmul.f32 %v576_v25, %v572_v29 }
0x12ab   :  { %v854_v9 = vpop.permute.xlu2 %853 }
0x12ac   :  { %1302 = vmatmul.msk.bf16.vlgmr.msrb.gmra.mxu2 %vm98_vm0, %v854_v9 }
0x132f   :  { %v867_v17 = vpop.f32.mrf.mxu2 }
0x1330   :  { %v872_v18 = vrot.slane %v867_v17, 4 }
0x1332   :  { %v874_v20 = vadd.f32 %v872_v18, %v649_v45 }
0x1334   :  { %895 = vrot.lane.b32.xlu0 %v874_v20, %s1550_s0  ;;  %v1303_v30 = vmul.f32 -1.442695, %v874_v20 }
0x1336   :  { %1411 = vpow2.f32 %v1303_v30 }
0x1337   :  { %v869_v28 = vpop.f32.mrf.mxu2 }
0x133c   :  { %580 = vrot.lane.b32.xlu0 %v578_v2, %s1546_s20  ;;  %v1412_v33 = vpop.eup %1411 }
0x133d   :  { %v878_v36 = vadd.f32 1.0, %v1412_v33 }
0x133f   :  { %1413 = vrcp.f32 %v878_v36  ;;  %v890_v45 = vand.u32 2147483648, %v878_v36  ;;  %vm884_vm3 = vweird.f32 %v878_v36  ;;  %v888_v46 = vand.u32 2147483647, %v878_v36 }
0x1341   :  { %v891_v48 = vor.u32 1.1754944e-38, %v890_v45  ;;  %vm889_vm5 = vcmp.eq.f32.partialorder %v888_v46, 8.507059e+37 }
0x1345   :  { %v1414_v37 = vpop.eup %1413 }
0x1346   :  { %v880_v39 = vmul.f32 %v1414_v37, %v878_v36  ;;  %vm885_vm2 = vweird.f32 %v1414_v37 }
0x1347   :  { %vm886_vm4 = vmor %vm884_vm3, %vm885_vm2 }
0x1348   :  { %v881_v40 = vsub.f32 1.0, %v880_v39 }
0x134a   :  { %v882_v41 = vmul.f32 %v1414_v37, %v881_v40 }
0x134c   :  { %v883_v43 = vadd.f32 %v1414_v37, %v882_v41 }
0x134e   :  { %v887_v47 = vsel %vm886_vm4, %v1414_v37, %v883_v43 }
0x134f   :  { %v892_v50 = vsel %vm889_vm5, %v891_v48, %v887_v47 }
0x1350   :  { %v905_v1 = vsub.f32 1.0, %v892_v50 }
0x13a6   :  { %v896_v49 = vpop.permute.xlu0 %895 }
0x13a7   :  { %v898_v51 = vmul.f32 %v896_v49, %v892_v50 }
0x13a9   :  { %900 = vrot.lane.b32.xlu2 %v898_v51, %s1546_s20 }
0x13ae   :  { %v581_v34 = vpop.permute.xlu0 %580 }
0x13af   :  { %v583_v35 = vadd.f32 %v581_v34, %v552_v3  ;;  %v912_v3 = vrot.slane %v1723_v7, 4 }
0x13b1   :  { %1415 = vtanh.f32 %v583_v35  ;;  %v914_v5 = vmul.f32 %v912_v3, %v892_v50 }
0x13b7   :  { %v1416_v52 = vpop.eup %1415 }
0x13b8   :  { %587 = vrot.lane.b32.xlu2 %v1416_v52, %s1551_s2 }
0x1403   :  { %v901_v53 = vpop.permute.xlu2 %900 }
0x1404   :  { %v903_v54 = vadd.f32 %v901_v53, %v874_v20 }
0x1406   :  { %1417 = vtanh.f32 %v903_v54 }
0x140c   :  { %v1418_v55 = vpop.eup %1417 }
0x140d   :  { %907 = vrot.lane.b32.xlu1 %v1418_v55, %s1551_s2 }
0x1412   :  { %v588_v57 = vpop.permute.xlu2 %587 }
0x1413   :  { %v590_v58 = vmul.f32 %v588_v57, %v585_v56 }
0x1415   :  { %v592_v60 = vadd.f32 %v591_v44, %v590_v58 }
0x1417   :  { %v603_v61 = vrot.slane %v592_v60, 4 }
0x1419   :  { %v609_v63 = vsel %vm605_vm6, %v1701_v24, %v603_v61 }
0x141a   :  { %v611_v0 = vpack.c.bf16 %v609_v63, %v608_v62 }
0x141c   :  { %617 = vrot.lane.b32.xlu1 %v611_v0, %s1551_s2 }
0x147f   :  { %v908_v4 = vpop.permute.xlu1 %907 }
0x1480   :  { %v910_v6 = vmul.f32 %v908_v4, %v905_v1 }
0x1482   :  { %v915_v8 = vadd.f32 %v914_v5, %v910_v6 }
0x1484   :  { %v916_v9 = vpack.c.bf16 %v915_v8, %v915_v8  ;;  %v1749_v32 = vsel %vm605_vm6, %v1723_v7, %v915_v8  ;;  %v975_v29 = vrot.slane %v915_v8, 4 }
0x1485   :  { %v1176_v24 = vpack.c.bf16 %v1749_v32, %v1745_v26 }
0x1486   :  { %v918_v10 = vrot.slane %v916_v9, 2 }
0x1488   :  { %919 = vrot.lane.b32.xlu0 %v918_v10, %s1551_s2 }
0x148e   :  { %v618_v12 = vpop.permute.xlu1 %617 }
0x148f   :  { %1288 = vmatmul.msk.bf16.gmra.mxu1 %vm98_vm0, %v618_v12 }
0x14fa   :  { %v920_v13 = vpop.permute.xlu0 %919 }
0x14fb   :  { %1304 = vmatmul.msk.bf16.vlgmr.msrb.gmra.mxu3 %vm98_vm0, %v920_v13 }
0x150c   :  { %v651_v11 = vpop.f32.mrf.mxu1 }
0x150d   :  { %v652_v31 = vadd.f32 %v1666_v42, %v651_v11 }
0x157e   :  { %v933_v38 = vpop.f32.mrf.mxu3 }
0x157f   :  { %v937_v14 = vadd.f32 %v933_v38, %v652_v31  ;;  %v653_v38 = vpop.f32.mrf.mxu1 }
0x1581   :  { %v1305_v15 = vmul.f32 -1.442695, %v937_v14  ;;  %958 = vrot.lane.b32.xlu2 %v937_v14, %s1550_s0 }
0x1583   :  { %1419 = vpow2.f32 %v1305_v15 }
0x1586   :  { %v935_v7 = vpop.f32.mrf.mxu3 }
0x1589   :  { %v1420_v16 = vpop.eup %1419 }
0x158a   :  { %v941_v17 = vadd.f32 1.0, %v1420_v16 }
0x158c   :  { %1421 = vrcp.f32 %v941_v17  ;;  %v953_v21 = vand.u32 2147483648, %v941_v17  ;;  %v951_v23 = vand.u32 2147483647, %v941_v17  ;;  %vm947_vm8 = vweird.f32 %v941_v17 }
0x158e   :  { %v954_v27 = vor.u32 1.1754944e-38, %v953_v21  ;;  %vm952_vm10 = vcmp.eq.f32.partialorder %v951_v23, 8.507059e+37 }
0x1592   :  { %v1422_v18 = vpop.eup %1421 }
0x1593   :  { %v943_v19 = vmul.f32 %v1422_v18, %v941_v17  ;;  %vm948_vm7 = vweird.f32 %v1422_v18 }
0x1594   :  { %vm949_vm9 = vmor %vm947_vm8, %vm948_vm7 }
0x1595   :  { %v944_v20 = vsub.f32 1.0, %v943_v19 }
0x1597   :  { %v945_v22 = vmul.f32 %v1422_v18, %v944_v20 }
0x1599   :  { %v946_v25 = vadd.f32 %v1422_v18, %v945_v22 }
0x159b   :  { %v950_v28 = vsel %vm949_vm9, %v1422_v18, %v946_v25 }
0x159c   :  { %v955_v2 = vsel %vm952_vm10, %v954_v27, %v950_v28 }
0x159d   :  { %v977_v30 = vmul.f32 %v975_v29, %v955_v2  ;;  %v968_v41 = vsub.f32 1.0, %v955_v2 }
0x15db   :  { %v959_v33 = vpop.permute.xlu2 %958 }
0x15dc   :  { %v961_v36 = vmul.f32 %v959_v33, %v955_v2 }
0x15de   :  { %963 = vrot.lane.b32.xlu0 %v961_v36, %s1546_s20 }
0x1650   :  { %v964_v37 = vpop.permute.xlu0 %963 }
0x1651   :  { %v966_v39 = vadd.f32 %v964_v37, %v937_v14  ;;  %v654_v14 = vadd.f32 %v1666_v42, %v653_v38 }
0x1653   :  { %1423 = vtanh.f32 %v966_v39 }
0x1659   :  { %v1424_v40 = vpop.eup %1423 }
0x165a   :  { %970 = vrot.lane.b32.xlu1 %v1424_v40, %s1551_s2 }
0x16cc   :  { %v971_v43 = vpop.permute.xlu1 %970 }
0x16cd   :  { %v973_v45 = vmul.f32 %v971_v43, %v968_v41 }
0x16cf   :  { %v1760_v46 = vadd.f32 %v977_v30, %v973_v45 }
0x16d1   :  { %v979_v47 = vpack.c.bf16 %v1760_v46, %v1760_v46  ;;  %v1040_v6 = vrot.slane %v1760_v46, 4 }
0x16d3   :  { %981 = vrot.lane.b32.xlu2 %v979_v47, %s1551_s2 }
0x172d   :  { %v982_v48 = vpop.permute.xlu2 %981 }
0x172e   :  { %1306 = vmatmul.msk.bf16.vlgmr.msra.gmra.mxu0 %vm98_vm0, %v982_v48 }
0x17ab   :  { %v995_v49 = vpop.f32.mrf.mxu0 }
0x17ac   :  { %v1000_v50 = vrot.slane %v995_v49, 4 }
0x17ae   :  { %v1002_v51 = vadd.f32 %v1000_v50, %v652_v31 }
0x17b0   :  { %1023 = vrot.lane.b32.xlu0 %v1002_v51, %s1550_s0  ;;  %v1307_v35 = vmul.f32 -1.442695, %v1002_v51 }
0x17b2   :  { %1425 = vpow2.f32 %v1307_v35 }
0x17b3   :  { %v997_v34 = vpop.f32.mrf.mxu0 }
0x17b8   :  { %v1426_v52 = vpop.eup %1425 }
0x17b9   :  { %v1006_v53 = vadd.f32 1.0, %v1426_v52 }
0x17bb   :  { %1427 = vrcp.f32 %v1006_v53  ;;  %v1018_v58 = vand.u32 2147483648, %v1006_v53  ;;  %vm1012_vm12 = vweird.f32 %v1006_v53  ;;  %v1016_v59 = vand.u32 2147483647, %v1006_v53 }
0x17bd   :  { %v1019_v61 = vor.u32 1.1754944e-38, %v1018_v58  ;;  %vm1017_vm14 = vcmp.eq.f32.partialorder %v1016_v59, 8.507059e+37 }
0x17c1   :  { %v1428_v54 = vpop.eup %1427 }
0x17c2   :  { %v1008_v55 = vmul.f32 %v1428_v54, %v1006_v53  ;;  %vm1013_vm11 = vweird.f32 %v1428_v54 }
0x17c3   :  { %vm1014_vm13 = vmor %vm1012_vm12, %vm1013_vm11 }
0x17c4   :  { %v1009_v56 = vsub.f32 1.0, %v1008_v55 }
0x17c6   :  { %v1010_v57 = vmul.f32 %v1428_v54, %v1009_v56  ;;  %v1331_v56 = vld [vmem:[#allocation5 + $0x48] sm:$0xff] }
0x17c7   :  { %1209 = vmatpush.bf16.msra.mxu3 %v1331_v56 }
0x17c8   :  { %v1011_v44 = vadd.f32 %v1428_v54, %v1010_v57  ;;  %v1330_v57 = vld [vmem:[#allocation5 + $0x40] sm:$0xff] }
0x17ca   :  { %v1015_v60 = vsel %vm1014_vm13, %v1428_v54, %v1011_v44 }
0x17cb   :  { %v1020_v63 = vsel %vm1017_vm14, %v1019_v61, %v1015_v60  ;;  %1210 = vmatpush.bf16.msra.mxu3 %v1330_v57 }
0x17cc   :  { %v1033_v5 = vsub.f32 1.0, %v1020_v63  ;;  %v1042_v9 = vmul.f32 %v1040_v6, %v1020_v63 }
0x1822   :  { %v1024_v62 = vpop.permute.xlu0 %1023 }
0x1823   :  { %v1026_v0 = vmul.f32 %v1024_v62, %v1020_v63 }
0x1825   :  { %1028 = vrot.lane.b32.xlu1 %v1026_v0, %s1546_s20 }
0x1897   :  { %v1029_v1 = vpop.permute.xlu1 %1028 }
0x1898   :  { %v1031_v3 = vadd.f32 %v1029_v1, %v1002_v51 }
0x189a   :  { %1429 = vtanh.f32 %v1031_v3 }
0x18a0   :  { %v1430_v4 = vpop.eup %1429 }
0x18a1   :  { %1035 = vrot.lane.b32.xlu2 %v1430_v4, %s1551_s2 }
0x18fb   :  { %v1036_v8 = vpop.permute.xlu2 %1035 }
0x18fc   :  { %v1038_v10 = vmul.f32 %v1036_v8, %v1033_v5  ;;  %v1346_v8 = vld [vmem:[#allocation7 + $0x3] ss:$0 sm:$0xff] }
0x18fe   :  { %v1770_v12 = vadd.f32 %v1042_v9, %v1038_v10 }
0x1900   :  { %v1044_v13 = vpack.c.bf16 %v1770_v12, %v1770_v12  ;;  %v1103_v41 = vrot.slane %v1770_v12, 4 }
0x1902   :  { %v1046_v11 = vrot.slane %v1044_v13, 2 }
0x1904   :  { %1047 = vrot.lane.b32.xlu0 %v1046_v11, %s1551_s2 }
0x1976   :  { %v1048_v31 = vpop.permute.xlu0 %1047 }
0x1977   :  { %1308 = vmatmul.msk.bf16.vlgmr.msrb.gmra.mxu1 %vm98_vm0, %v1048_v31 }
0x19f4   :  { %v1061_v15 = vpop.f32.mrf.mxu1 }
0x19f5   :  { %v1065_v7 = vadd.f32 %v1061_v15, %v654_v14 }
0x19f7   :  { %1086 = vrot.lane.b32.xlu1 %v1065_v7, %s1550_s0  ;;  %v1309_v17 = vmul.f32 -1.442695, %v1065_v7 }
0x19f9   :  { %1431 = vpow2.f32 %v1309_v17  ;;  %v1174_v17 = vsel %vm605_vm6, %v1760_v46, %v1770_v12 }
0x19fc   :  { %v1063_v16 = vpop.f32.mrf.mxu1 }
0x19ff   :  { %v1432_v18 = vpop.eup %1431 }
0x1a00   :  { %v1069_v19 = vadd.f32 1.0, %v1432_v18 }
0x1a02   :  { %1433 = vrcp.f32 %v1069_v19  ;;  %v1081_v27 = vand.u32 2147483648, %v1069_v19  ;;  %vm1075_vm1 = vweird.f32 %v1069_v19  ;;  %v1079_v28 = vand.u32 2147483647, %v1069_v19 }
0x1a04   :  { %v1082_v29 = vor.u32 1.1754944e-38, %v1081_v27  ;;  %vm1080_vm3 = vcmp.eq.f32.partialorder %v1079_v28, 8.507059e+37 }
0x1a08   :  { %v1434_v20 = vpop.eup %1433 }
0x1a09   :  { %v1071_v21 = vmul.f32 %v1434_v20, %v1069_v19  ;;  %vm1076_vm15 = vweird.f32 %v1434_v20 }
0x1a0a   :  { %vm1077_vm2 = vmor %vm1075_vm1, %vm1076_vm15 }
0x1a0b   :  { %v1072_v22 = vsub.f32 1.0, %v1071_v21 }
0x1a0d   :  { %v1073_v23 = vmul.f32 %v1434_v20, %v1072_v22 }
0x1a0f   :  { %v1074_v25 = vadd.f32 %v1434_v20, %v1073_v23 }
0x1a11   :  { %v1078_v42 = vsel %vm1077_vm2, %v1434_v20, %v1074_v25 }
0x1a12   :  { %v1083_v30 = vsel %vm1080_vm3, %v1082_v29, %v1078_v42 }
0x1a13   :  { %v1096_v40 = vsub.f32 1.0, %v1083_v30  ;;  %v1105_v45 = vmul.f32 %v1103_v41, %v1083_v30 }
0x1a69   :  { %v1087_v2 = vpop.permute.xlu1 %1086 }
0x1a6a   :  { %v1089_v33 = vmul.f32 %v1087_v2, %v1083_v30 }
0x1a6c   :  { %1091 = vrot.lane.b32.xlu2 %v1089_v33, %s1546_s20 }
0x1ac6   :  { %v1092_v36 = vpop.permute.xlu2 %1091 }
0x1ac7   :  { %v1094_v37 = vadd.f32 %v1092_v36, %v1065_v7 }
0x1ac9   :  { %1435 = vtanh.f32 %v1094_v37 }
0x1acf   :  { %v1436_v39 = vpop.eup %1435 }
0x1ad0   :  { %1098 = vrot.lane.b32.xlu0 %v1436_v39, %s1551_s2 }
0x1b42   :  { %v1099_v43 = vpop.permute.xlu0 %1098 }
0x1b43   :  { %v1101_v47 = vmul.f32 %v1099_v43, %v1096_v40 }
0x1b45   :  { %v1106_v48 = vadd.f32 %v1105_v45, %v1101_v47 }
0x1b47   :  { %v1107_v49 = vpack.c.bf16 %v1106_v48, %v1106_v48  ;;  %v1168_v38 = vrot.slane %v1106_v48, 4 }
0x1b49   :  { %1109 = vrot.lane.b32.xlu1 %v1107_v49, %s1551_s2 }
0x1bbb   :  { %v1110_v50 = vpop.permute.xlu1 %1109 }
0x1bbc   :  { %1310 = vmatmul.msk.bf16.vlgmr.msra.gmra.mxu2 %vm98_vm0, %v1110_v50 }
0x1c3f   :  { %v1123_v51 = vpop.f32.mrf.mxu2 }
0x1c40   :  { %v1128_v34 = vrot.slane %v1123_v51, 4 }
0x1c42   :  { %v1130_v35 = vadd.f32 %v1128_v34, %v654_v14 }
0x1c44   :  { %1151 = vrot.lane.b32.xlu2 %v1130_v35, %s1550_s0  ;;  %v1311_v53 = vmul.f32 -1.442695, %v1130_v35 }
0x1c46   :  { %1437 = vpow2.f32 %v1311_v53 }
0x1c47   :  { %v1125_v52 = vpop.f32.mrf.mxu2 }
0x1c4c   :  { %1181 = vrot.lane.b32.xlu2 %v1176_v24, %s1551_s2  ;;  %v1438_v54 = vpop.eup %1437 }
0x1c4d   :  { %v1134_v55 = vadd.f32 1.0, %v1438_v54 }
0x1c4f   :  { %1439 = vrcp.f32 %v1134_v55  ;;  %v1146_v62 = vand.u32 2147483648, %v1134_v55  ;;  %vm1140_vm5 = vweird.f32 %v1134_v55  ;;  %v1144_v63 = vand.u32 2147483647, %v1134_v55 }
0x1c51   :  { %v1147_v32 = vor.u32 1.1754944e-38, %v1146_v62  ;;  %vm1145_vm8 = vcmp.eq.f32.partialorder %v1144_v63, 8.507059e+37 }
0x1c55   :  { %v1440_v44 = vpop.eup %1439 }
0x1c56   :  { %v1136_v58 = vmul.f32 %v1440_v44, %v1134_v55  ;;  %vm1141_vm4 = vweird.f32 %v1440_v44 }
0x1c57   :  { %vm1142_vm7 = vmor %vm1140_vm5, %vm1141_vm4 }
0x1c58   :  { %v1137_v59 = vsub.f32 1.0, %v1136_v58 }
0x1c5a   :  { %v1138_v60 = vmul.f32 %v1440_v44, %v1137_v59 }
0x1c5c   :  { %v1139_v61 = vadd.f32 %v1440_v44, %v1138_v60 }
0x1c5e   :  { %v1143_v26 = vsel %vm1142_vm7, %v1440_v44, %v1139_v61 }
0x1c5f   :  { %v1148_v0 = vsel %vm1145_vm8, %v1147_v32, %v1143_v26 }
0x1c60   :  { %v1161_v31 = vsub.f32 1.0, %v1148_v0  ;;  %v1170_v15 = vmul.f32 %v1168_v38, %v1148_v0 }
0x1c9e   :  { %v1152_v24 = vpop.permute.xlu2 %1151 }
0x1c9f   :  { %v1154_v1 = vmul.f32 %v1152_v24, %v1148_v0 }
0x1ca1   :  { %1156 = vrot.lane.b32.xlu0 %v1154_v1, %s1546_s20 }
0x1ca6   :  { %v1182_v3 = vpop.permute.xlu2 %1181 }
0x1ca7   :  { %1320 = vmatmul.msk.bf16.vlgmr.msra.gmra.mxu3 %vm98_vm0, %v1182_v3 }
0x1d13   :  { %v1157_v4 = vpop.permute.xlu0 %1156 }
0x1d14   :  { %v1159_v5 = vadd.f32 %v1157_v4, %v1130_v35 }
0x1d16   :  { %1441 = vtanh.f32 %v1159_v5 }
0x1d1c   :  { %v1442_v6 = vpop.eup %1441 }
0x1d1d   :  { %1163 = vrot.lane.b32.xlu1 %v1442_v6, %s1551_s2 }
0x1d2a   :  { %v1212_v9 = vpop.f32.mrf.mxu3 }
0x1d2b   :  { %v1213_v10 = vadd.f32 %v1346_v8, %v1212_v9 }
0x1d2d   :  { %1222 = vst [vmem:[#allocation8] sm:$0xff] %v1213_v10 }
0x1d32   :  { %v1214_v13 = vpop.f32.mrf.mxu3 }
0x1d33   :  { %v1215_v11 = vadd.f32 %v1346_v8, %v1214_v13 }
0x1d35   :  { %1223 = vst [vmem:[#allocation8 + $0x8] sm:$0xff] %v1215_v11 }
0x1d8f   :  { %v1164_v14 = vpop.permute.xlu1 %1163 }
0x1d90   :  { %v1166_v7 = vmul.f32 %v1164_v14, %v1161_v31 }
0x1d92   :  { %v1171_v16 = vadd.f32 %v1170_v15, %v1166_v7 }
0x1d94   :  { %v1175_v18 = vsel %vm605_vm6, %v1106_v48, %v1171_v16 }
0x1d95   :  { %v1177_v19 = vpack.c.bf16 %v1175_v18, %v1174_v17 }
0x1d97   :  { %1183 = vrot.lane.b32.xlu0 %v1177_v19, %s1551_s2 }
0x1e09   :  { %v1184_v20 = vpop.permute.xlu0 %1183 }
0x1e0a   :  { %1321 = vmatmul.msk.bf16.gmra.mxu3 %vm98_vm0, %v1184_v20 }
0x1e8d   :  { %v1217_v21 = vpop.f32.mrf.mxu3 }
0x1e8e   :  { %v1218_v22 = vadd.f32 %v1346_v8, %v1217_v21 }
0x1e90   :  { %1224 = vst [vmem:[#allocation8 + $0x10] sm:$0xff] %v1218_v22 }
0x1e95   :  { %v1219_v23 = vpop.f32.mrf.mxu3 }
0x1e96   :  { %v1220_v46 = vadd.f32 %v1346_v8, %v1219_v23 }
0x1e98   :  { %1225 = vst [vmem:[#allocation8 + $0x18] sm:$0xff] %v1220_v46 }
0x1e99   :  { %1238 = dma.vmem_to_hbm [thread:$0]  %s1231_s29, 512, %s1233_s5, [#allocation4], %s1554_s6, %s1554_s6, %s1555_s7  }
0x1e9a   :  { %1543 = dma.done.wait [#allocation4], 512  }
0x1e9b   :  { %1544 = vsyncadd [#allocation4], 4294966784 }
0x1e9c   :  { %1243 = vsyncpa [#allocation3], 1 }
0x1e9d   :  { %1244 = vsyncpa [#allocation6], 1 }
0x1e9e   :  { %1245 = vsyncpa [#allocation4], 1 }

</bundles_post_ra>
